<compile_context>
chip_gen: v6e
topology: v6e:2x2x1
jax: 0.10.0
libtpu: 0.0.40
codegen_flags: <defaults>
</compile_context>

<pallas_src>
import numpy as np
import jax
import jax.numpy as jnp
from jax.experimental import pallas as pl
from jax.experimental.pallas import tpu as pltpu

_LANES = 128


# --------------------------------------------------------------------------- #
# Static selection pattern (trace-time only).
# --------------------------------------------------------------------------- #
def simple_norm_rows(dim_in: int, dim_out: int):
    """Column-selection indices, bit-exact with the PyTorch construction:
    torch.arange(dim_out) / dim_out * dim_in is computed in float32 (torch's
    default dtype), then .long() truncates toward zero."""
    cols = np.arange(dim_out, dtype=np.float32)
    mapped = cols / np.float32(dim_out) * np.float32(dim_in)
    return [int(v) for v in mapped.astype(np.int64)]   # non-negative -> trunc == floor


def make_simple_norm_mat(dim_in: int, dim_out: int, dtype=jnp.float32):
    """Torch-equivalent one-hot matrix (reference / validation only)."""
    rows = jnp.asarray(simple_norm_rows(dim_in, dim_out), dtype=jnp.int32)
    cols = jnp.arange(dim_out)
    return jnp.zeros((dim_in, dim_out), dtype=dtype).at[rows, cols].set(1.0)


def _fold_factor(dim_in: int, dim_out: int, m: int, max_r: int = 64) -> int:
    """Smallest row-fold r making the layout lane-dense (prefer both input and
    output dense, then output-only dense), subject to r | m."""
    preds = (
        lambda r: (r * dim_in) % _LANES == 0 and (r * dim_out) % _LANES == 0,
        lambda r: (r * dim_out) % _LANES == 0,
    )
    for pred in preds:
        for r in range(1, max_r + 1):
            if pred(r) and m % r == 0:
                return r
    return 1


def _gather_plan(folded_rows, in_w: int):
    """Split output columns into <=128-lane chunks; each chunk gathers from a
    same-width static window of the input (take_along_axis-compatible shapes).
    Returns None if a chunk's source span cannot fit in one window."""
    out_w = len(folded_rows)
    plan = []
    for c0 in range(0, out_w, _LANES):
        idx = [int(v) for v in folded_rows[c0:c0 + _LANES]]
        cw = len(idx)
        lo, hi = min(idx), max(idx)
        if in_w >= cw:
            if hi - lo + 1 > cw:
                return None                      # can't cover with one window
            s0 = min(lo, in_w - cw)
            local = tuple(v - s0 for v in idx)
            reps = 1
        else:
            reps = -(-cw // in_w)                # widen narrow input by tiling
            s0 = 0
            local = tuple(idx)
        if reps == 1 and local == tuple(range(cw)):
            plan.append(("copy", s0, None, cw, 1))
        else:
            plan.append(("gather", s0, local, cw, reps))
    return plan


def _selection_pieces(rows):
    """Run-length-encode the (non-decreasing) selection into slice/broadcast
    pieces, merging contiguous unit runs into wide slice copies."""
    runs = []
    for r in rows:
        r = int(r)
        if runs and runs[-1][0] == r:
            runs[-1][1] += 1
        else:
            runs.append([r, 1])
    pieces, out_off = [], 0
    for col, cnt in runs:
        if (cnt == 1 and pieces and pieces[-1][0] == "slice"
                and pieces[-1][2] + pieces[-1][3] == col
                and pieces[-1][1] + pieces[-1][3] == out_off):
            pieces[-1][3] += 1
        elif cnt == 1:
            pieces.append(["slice", out_off, col, 1])
        else:
            pieces.append(["bcast", out_off, col, cnt])
        out_off += cnt
    return [tuple(p) for p in pieces]


# --------------------------------------------------------------------------- #
# Kernels (pure data movement; single full-width store of the output block).
# --------------------------------------------------------------------------- #
def _make_gather_kernel(plan):
    """Fast path: per-128-lane-chunk static lane gather (dynamic_gather on XLU)."""
    def kernel(x_ref, o_ref):
        x = x_ref[...]
        tm = x.shape[0]
        chunks = []
        for kind, s0, local, cw, reps in plan:
            if reps == 1:
                window = x[:, s0:s0 + cw]
            else:
                window = jnp.concatenate([x] * reps, axis=-1)[:, :cw]
            if kind == "copy":
                chunks.append(window)
            else:
                idx = jnp.asarray(local, dtype=jnp.int32)
                idx2d = jnp.broadcast_to(idx[None, :], (tm, cw))
                chunks.append(jnp.take_along_axis(window, idx2d, axis=1,
                                                  mode="promise_in_bounds"))
        out = chunks[0] if len(chunks) == 1 else jnp.concatenate(chunks, axis=-1)
        o_ref[...] = out.astype(o_ref.dtype)
    return kernel


def _make_concat_kernel(pieces):
    """Safe path: static slices / lane broadcasts assembled with one concatenate
    and one full-width store (no gather op needed)."""
    def kernel(x_ref, o_ref):
        x = x_ref[...]
        tm = x.shape[0]
        parts = []
        for kind, _out_off, src, width in pieces:
            if kind == "slice":
                parts.append(x[:, src:src + width])
            else:
                parts.append(jnp.broadcast_to(x[:, src:src + 1], (tm, width)))
        out = parts[0] if len(parts) == 1 else jnp.concatenate(parts, axis=-1)
        o_ref[...] = out.astype(o_ref.dtype)
    return kernel


# --------------------------------------------------------------------------- #
# Wrapper.
# --------------------------------------------------------------------------- #
def simple_norm_forward(x, dim_in: int, dim_out: int, *,
                        tile_rows: int = 8192,
                        min_kernel_rows: int = 2048,
                        vmem_budget_bytes: int = 24 << 20):
    """x: (..., dim_in) -> (..., dim_out); equivalent to x @ mat of Simple_Norm."""
    assert x.shape[-1] == dim_in, (x.shape, dim_in)
    rows = simple_norm_rows(dim_in, dim_out)

    lead = x.shape[:-1]
    m = int(np.prod(lead, dtype=np.int64)) if lead else 1

    if m < max(min_kernel_rows, 1):
        # Tiny problem: kernel dispatch + pipeline prologue dominates; let XLA
        # fuse the static gather into surrounding ops instead.
        return jnp.take(x, jnp.asarray(rows, dtype=jnp.int32), axis=-1)

    # Lane-dense row folding.
    r = _fold_factor(dim_in, dim_out, m)
    m_f, in_w, out_w = m // r, r * dim_in, r * dim_out
    folded_rows = [f * dim_in + int(c) for f in range(r) for c in rows]

    plan = _gather_plan(folded_rows, in_w)
    if plan is None:
        # TODO(synk): heavy down-selection (source span > 128 lanes per output
        # chunk) has no single-window gather form; leave it to XLA.
        return jnp.take(x, jnp.asarray(rows, dtype=jnp.int32), axis=-1)

    itemsize = x.dtype.itemsize
    row_align = max(8, 32 // itemsize)            # 8 rows f32, 16 bf16, 32 int8

    # Tile rows: large enough to amortise per-step overhead, bounded by VMEM.
    tm_f = max(row_align, (tile_rows // r) // row_align * row_align)
    max_tm = max(row_align,
                 (vmem_budget_bytes // (2 * (in_w + out_w) * itemsize))
                 // row_align * row_align)
    tm_f = min(tm_f, max_tm)
    if tm_f >= m_f:
        tm_f = m_f                                # single full-extent block
        if m_f >= 1024 and m_f % (2 * row_align) == 0:
            tm_f = m_f // 2                       # >=2 blocks so v7x uses both TCs
    grid = (pl.cdiv(m_f, tm_f),)

    x2d = x.reshape(m_f, in_w)

    def run(kernel):
        return pl.pallas_call(
            kernel,
            out_shape=jax.ShapeDtypeStruct((m_f, out_w), x.dtype),
            grid=grid,
            in_specs=[pl.BlockSpec((tm_f, in_w), lambda i: (i, 0))],
            out_specs=pl.BlockSpec((tm_f, out_w), lambda i: (i, 0)),
            compiler_params=pltpu.CompilerParams(
                dimension_semantics=("parallel",),   # row tiles shard across TCs
                vmem_limit_bytes=32 * 1024 * 1024,   # safe on v5e/v6e/v7x
            ),
        )(x2d)

    try:
        out2d = run(_make_gather_kernel(plan))
    except Exception:
        # Mosaic build without take_along_axis/dynamic_gather lowering:
        # retry with the slices+broadcast+concat kernel (still one store).
        out2d = run(_make_concat_kernel(_selection_pieces(folded_rows)))

    return out2d.reshape(*lead, dim_out)


# --------------------------------------------------------------------------- #
# Demo / validation.
# --------------------------------------------------------------------------- #
if __name__ == "__main__":
    B, T, DIM_IN, DIM_OUT = 2, 8, 32, 64

    key = jax.random.PRNGKey(0)
    k1, k2, k3 = jax.random.split(key, 3)
    mat = make_simple_norm_mat(DIM_IN, DIM_OUT, dtype=jnp.float32)

    # 1) Small shape: force the Pallas path (min_kernel_rows=0), single block.
    x = jax.random.normal(k1, (B, T, DIM_IN), dtype=jnp.float32)
    out = jax.block_until_ready(simple_norm_forward(x, DIM_IN, DIM_OUT,
                                                    min_kernel_rows=0))
    ref = jnp.matmul(x, mat)
    assert out.shape == (B, T, DIM_OUT), out.shape
    assert jnp.allclose(out, ref, atol=1e-6, rtol=1e-6), "mismatch (small)"

    # 2) Larger M: takes the Pallas path by default, grid of >= 2 row tiles.
    x_big = jax.random.normal(k2, (4, 1024, DIM_IN), dtype=jnp.float32)
    out_big = jax.block_until_ready(simple_norm_forward(x_big, DIM_IN, DIM_OUT))
    ref_big = jnp.matmul(x_big, mat)
    assert out_big.shape == (4, 1024, DIM_OUT), out_big.shape
    assert jnp.allclose(out_big, ref_big, atol=1e-6, rtol=1e-6), "mismatch (big)"

    # 3) Ragged M: exercises multiple grid steps with a partial final tile.
    x_rag = jax.random.normal(k3, (4, 1000, DIM_IN), dtype=jnp.float32)
    out_rag = jax.block_until_ready(
        simple_norm_forward(x_rag, DIM_IN, DIM_OUT, tile_rows=1024,
                            min_kernel_rows=0))
    ref_rag = jnp.matmul(x_rag, mat)
    assert out_rag.shape == (4, 1000, DIM_OUT), out_rag.shape
    assert jnp.allclose(out_rag, ref_rag, atol=1e-6, rtol=1e-6), "mismatch (ragged)"

    print("KERNEL_OK")
</pallas_src>

<mosaic_0001>
module attributes {stable_mosaic.version = 11 : i64} {
  func.func @kernel(%arg0: i32, %arg1: memref<4x128xf32, #tpu.memory_space<vmem>>, %arg2: memref<4x256xf32, #tpu.memory_space<vmem>>) attributes {dimension_semantics = [#tpu.dimension_semantics<parallel>], iteration_bounds = array<i64: 1>, scalar_prefetch = 0 : i64, scratch_operands = 0 : i64, tpu.core_type = #tpu.core_type<tc>, window_params = [{transform_indices = @transform_0, window_bounds = array<i64: 4, 128>}, {transform_indices = @transform_1, window_bounds = array<i64: 4, 256>}]} {
    %c0 = arith.constant 0 : index
    %c0_0 = arith.constant 0 : index
    %0 = vector.load %arg1[%c0, %c0_0] : memref<4x128xf32, #tpu.memory_space<vmem>>, vector<4x128xf32>
    %1 = vector.extract_strided_slice %0 {offsets = [0, 0], sizes = [4, 1], strides = [1, 1]} : vector<4x128xf32> to vector<4x1xf32>
    %2 = vector.shape_cast %1 : vector<4x1xf32> to vector<4x1xf32>
    %3 = vector.broadcast %2 : vector<4x1xf32> to vector<4x2xf32>
    %4 = vector.extract_strided_slice %0 {offsets = [0, 1], sizes = [4, 1], strides = [1, 1]} : vector<4x128xf32> to vector<4x1xf32>
    %5 = vector.shape_cast %4 : vector<4x1xf32> to vector<4x1xf32>
    %6 = vector.broadcast %5 : vector<4x1xf32> to vector<4x2xf32>
    %7 = vector.extract_strided_slice %0 {offsets = [0, 2], sizes = [4, 1], strides = [1, 1]} : vector<4x128xf32> to vector<4x1xf32>
    %8 = vector.shape_cast %7 : vector<4x1xf32> to vector<4x1xf32>
    %9 = vector.broadcast %8 : vector<4x1xf32> to vector<4x2xf32>
    %10 = vector.extract_strided_slice %0 {offsets = [0, 3], sizes = [4, 1], strides = [1, 1]} : vector<4x128xf32> to vector<4x1xf32>
    %11 = vector.shape_cast %10 : vector<4x1xf32> to vector<4x1xf32>
    %12 = vector.broadcast %11 : vector<4x1xf32> to vector<4x2xf32>
    %13 = vector.extract_strided_slice %0 {offsets = [0, 4], sizes = [4, 1], strides = [1, 1]} : vector<4x128xf32> to vector<4x1xf32>
    %14 = vector.shape_cast %13 : vector<4x1xf32> to vector<4x1xf32>
    %15 = vector.broadcast %14 : vector<4x1xf32> to vector<4x2xf32>
    %16 = vector.extract_strided_slice %0 {offsets = [0, 5], sizes = [4, 1], strides = [1, 1]} : vector<4x128xf32> to vector<4x1xf32>
    %17 = vector.shape_cast %16 : vector<4x1xf32> to vector<4x1xf32>
    %18 = vector.broadcast %17 : vector<4x1xf32> to vector<4x2xf32>
    %19 = vector.extract_strided_slice %0 {offsets = [0, 6], sizes = [4, 1], strides = [1, 1]} : vector<4x128xf32> to vector<4x1xf32>
    %20 = vector.shape_cast %19 : vector<4x1xf32> to vector<4x1xf32>
    %21 = vector.broadcast %20 : vector<4x1xf32> to vector<4x2xf32>
    %22 = vector.extract_strided_slice %0 {offsets = [0, 7], sizes = [4, 1], strides = [1, 1]} : vector<4x128xf32> to vector<4x1xf32>
    %23 = vector.shape_cast %22 : vector<4x1xf32> to vector<4x1xf32>
    %24 = vector.broadcast %23 : vector<4x1xf32> to vector<4x2xf32>
    %25 = vector.extract_strided_slice %0 {offsets = [0, 8], sizes = [4, 1], strides = [1, 1]} : vector<4x128xf32> to vector<4x1xf32>
    %26 = vector.shape_cast %25 : vector<4x1xf32> to vector<4x1xf32>
    %27 = vector.broadcast %26 : vector<4x1xf32> to vector<4x2xf32>
    %28 = vector.extract_strided_slice %0 {offsets = [0, 9], sizes = [4, 1], strides = [1, 1]} : vector<4x128xf32> to vector<4x1xf32>
    %29 = vector.shape_cast %28 : vector<4x1xf32> to vector<4x1xf32>
    %30 = vector.broadcast %29 : vector<4x1xf32> to vector<4x2xf32>
    %31 = vector.extract_strided_slice %0 {offsets = [0, 10], sizes = [4, 1], strides = [1, 1]} : vector<4x128xf32> to vector<4x1xf32>
    %32 = vector.shape_cast %31 : vector<4x1xf32> to vector<4x1xf32>
    %33 = vector.broadcast %32 : vector<4x1xf32> to vector<4x2xf32>
    %34 = vector.extract_strided_slice %0 {offsets = [0, 11], sizes = [4, 1], strides = [1, 1]} : vector<4x128xf32> to vector<4x1xf32>
    %35 = vector.shape_cast %34 : vector<4x1xf32> to vector<4x1xf32>
    %36 = vector.broadcast %35 : vector<4x1xf32> to vector<4x2xf32>
    %37 = vector.extract_strided_slice %0 {offsets = [0, 12], sizes = [4, 1], strides = [1, 1]} : vector<4x128xf32> to vector<4x1xf32>
    %38 = vector.shape_cast %37 : vector<4x1xf32> to vector<4x1xf32>
    %39 = vector.broadcast %38 : vector<4x1xf32> to vector<4x2xf32>
    %40 = vector.extract_strided_slice %0 {offsets = [0, 13], sizes = [4, 1], strides = [1, 1]} : vector<4x128xf32> to vector<4x1xf32>
    %41 = vector.shape_cast %40 : vector<4x1xf32> to vector<4x1xf32>
    %42 = vector.broadcast %41 : vector<4x1xf32> to vector<4x2xf32>
    %43 = vector.extract_strided_slice %0 {offsets = [0, 14], sizes = [4, 1], strides = [1, 1]} : vector<4x128xf32> to vector<4x1xf32>
    %44 = vector.shape_cast %43 : vector<4x1xf32> to vector<4x1xf32>
    %45 = vector.broadcast %44 : vector<4x1xf32> to vector<4x2xf32>
    %46 = vector.extract_strided_slice %0 {offsets = [0, 15], sizes = [4, 1], strides = [1, 1]} : vector<4x128xf32> to vector<4x1xf32>
    %47 = vector.shape_cast %46 : vector<4x1xf32> to vector<4x1xf32>
    %48 = vector.broadcast %47 : vector<4x1xf32> to vector<4x2xf32>
    %49 = vector.extract_strided_slice %0 {offsets = [0, 16], sizes = [4, 1], strides = [1, 1]} : vector<4x128xf32> to vector<4x1xf32>
    %50 = vector.shape_cast %49 : vector<4x1xf32> to vector<4x1xf32>
    %51 = vector.broadcast %50 : vector<4x1xf32> to vector<4x2xf32>
    %52 = vector.extract_strided_slice %0 {offsets = [0, 17], sizes = [4, 1], strides = [1, 1]} : vector<4x128xf32> to vector<4x1xf32>
    %53 = vector.shape_cast %52 : vector<4x1xf32> to vector<4x1xf32>
    %54 = vector.broadcast %53 : vector<4x1xf32> to vector<4x2xf32>
    %55 = vector.extract_strided_slice %0 {offsets = [0, 18], sizes = [4, 1], strides = [1, 1]} : vector<4x128xf32> to vector<4x1xf32>
    %56 = vector.shape_cast %55 : vector<4x1xf32> to vector<4x1xf32>
    %57 = vector.broadcast %56 : vector<4x1xf32> to vector<4x2xf32>
    %58 = vector.extract_strided_slice %0 {offsets = [0, 19], sizes = [4, 1], strides = [1, 1]} : vector<4x128xf32> to vector<4x1xf32>
    %59 = vector.shape_cast %58 : vector<4x1xf32> to vector<4x1xf32>
    %60 = vector.broadcast %59 : vector<4x1xf32> to vector<4x2xf32>
    %61 = vector.extract_strided_slice %0 {offsets = [0, 20], sizes = [4, 1], strides = [1, 1]} : vector<4x128xf32> to vector<4x1xf32>
    %62 = vector.shape_cast %61 : vector<4x1xf32> to vector<4x1xf32>
    %63 = vector.broadcast %62 : vector<4x1xf32> to vector<4x2xf32>
    %64 = vector.extract_strided_slice %0 {offsets = [0, 21], sizes = [4, 1], strides = [1, 1]} : vector<4x128xf32> to vector<4x1xf32>
    %65 = vector.shape_cast %64 : vector<4x1xf32> to vector<4x1xf32>
    %66 = vector.broadcast %65 : vector<4x1xf32> to vector<4x2xf32>
    %67 = vector.extract_strided_slice %0 {offsets = [0, 22], sizes = [4, 1], strides = [1, 1]} : vector<4x128xf32> to vector<4x1xf32>
    %68 = vector.shape_cast %67 : vector<4x1xf32> to vector<4x1xf32>
    %69 = vector.broadcast %68 : vector<4x1xf32> to vector<4x2xf32>
    %70 = vector.extract_strided_slice %0 {offsets = [0, 23], sizes = [4, 1], strides = [1, 1]} : vector<4x128xf32> to vector<4x1xf32>
    %71 = vector.shape_cast %70 : vector<4x1xf32> to vector<4x1xf32>
    %72 = vector.broadcast %71 : vector<4x1xf32> to vector<4x2xf32>
    %73 = vector.extract_strided_slice %0 {offsets = [0, 24], sizes = [4, 1], strides = [1, 1]} : vector<4x128xf32> to vector<4x1xf32>
    %74 = vector.shape_cast %73 : vector<4x1xf32> to vector<4x1xf32>
    %75 = vector.broadcast %74 : vector<4x1xf32> to vector<4x2xf32>
    %76 = vector.extract_strided_slice %0 {offsets = [0, 25], sizes = [4, 1], strides = [1, 1]} : vector<4x128xf32> to vector<4x1xf32>
    %77 = vector.shape_cast %76 : vector<4x1xf32> to vector<4x1xf32>
    %78 = vector.broadcast %77 : vector<4x1xf32> to vector<4x2xf32>
    %79 = vector.extract_strided_slice %0 {offsets = [0, 26], sizes = [4, 1], strides = [1, 1]} : vector<4x128xf32> to vector<4x1xf32>
    %80 = vector.shape_cast %79 : vector<4x1xf32> to vector<4x1xf32>
    %81 = vector.broadcast %80 : vector<4x1xf32> to vector<4x2xf32>
    %82 = vector.extract_strided_slice %0 {offsets = [0, 27], sizes = [4, 1], strides = [1, 1]} : vector<4x128xf32> to vector<4x1xf32>
    %83 = vector.shape_cast %82 : vector<4x1xf32> to vector<4x1xf32>
    %84 = vector.broadcast %83 : vector<4x1xf32> to vector<4x2xf32>
    %85 = vector.extract_strided_slice %0 {offsets = [0, 28], sizes = [4, 1], strides = [1, 1]} : vector<4x128xf32> to vector<4x1xf32>
    %86 = vector.shape_cast %85 : vector<4x1xf32> to vector<4x1xf32>
    %87 = vector.broadcast %86 : vector<4x1xf32> to vector<4x2xf32>
    %88 = vector.extract_strided_slice %0 {offsets = [0, 29], sizes = [4, 1], strides = [1, 1]} : vector<4x128xf32> to vector<4x1xf32>
    %89 = vector.shape_cast %88 : vector<4x1xf32> to vector<4x1xf32>
    %90 = vector.broadcast %89 : vector<4x1xf32> to vector<4x2xf32>
    %91 = vector.extract_strided_slice %0 {offsets = [0, 30], sizes = [4, 1], strides = [1, 1]} : vector<4x128xf32> to vector<4x1xf32>
    %92 = vector.shape_cast %91 : vector<4x1xf32> to vector<4x1xf32>
    %93 = vector.broadcast %92 : vector<4x1xf32> to vector<4x2xf32>
    %94 = vector.extract_strided_slice %0 {offsets = [0, 31], sizes = [4, 1], strides = [1, 1]} : vector<4x128xf32> to vector<4x1xf32>
    %95 = vector.shape_cast %94 : vector<4x1xf32> to vector<4x1xf32>
    %96 = vector.broadcast %95 : vector<4x1xf32> to vector<4x2xf32>
    %97 = vector.extract_strided_slice %0 {offsets = [0, 32], sizes = [4, 1], strides = [1, 1]} : vector<4x128xf32> to vector<4x1xf32>
    %98 = vector.shape_cast %97 : vector<4x1xf32> to vector<4x1xf32>
    %99 = vector.broadcast %98 : vector<4x1xf32> to vector<4x2xf32>
    %100 = vector.extract_strided_slice %0 {offsets = [0, 33], sizes = [4, 1], strides = [1, 1]} : vector<4x128xf32> to vector<4x1xf32>
    %101 = vector.shape_cast %100 : vector<4x1xf32> to vector<4x1xf32>
    %102 = vector.broadcast %101 : vector<4x1xf32> to vector<4x2xf32>
    %103 = vector.extract_strided_slice %0 {offsets = [0, 34], sizes = [4, 1], strides = [1, 1]} : vector<4x128xf32> to vector<4x1xf32>
    %104 = vector.shape_cast %103 : vector<4x1xf32> to vector<4x1xf32>
    %105 = vector.broadcast %104 : vector<4x1xf32> to vector<4x2xf32>
    %106 = vector.extract_strided_slice %0 {offsets = [0, 35], sizes = [4, 1], strides = [1, 1]} : vector<4x128xf32> to vector<4x1xf32>
    %107 = vector.shape_cast %106 : vector<4x1xf32> to vector<4x1xf32>
    %108 = vector.broadcast %107 : vector<4x1xf32> to vector<4x2xf32>
    %109 = vector.extract_strided_slice %0 {offsets = [0, 36], sizes = [4, 1], strides = [1, 1]} : vector<4x128xf32> to vector<4x1xf32>
    %110 = vector.shape_cast %109 : vector<4x1xf32> to vector<4x1xf32>
    %111 = vector.broadcast %110 : vector<4x1xf32> to vector<4x2xf32>
    %112 = vector.extract_strided_slice %0 {offsets = [0, 37], sizes = [4, 1], strides = [1, 1]} : vector<4x128xf32> to vector<4x1xf32>
    %113 = vector.shape_cast %112 : vector<4x1xf32> to vector<4x1xf32>
    %114 = vector.broadcast %113 : vector<4x1xf32> to vector<4x2xf32>
    %115 = vector.extract_strided_slice %0 {offsets = [0, 38], sizes = [4, 1], strides = [1, 1]} : vector<4x128xf32> to vector<4x1xf32>
    %116 = vector.shape_cast %115 : vector<4x1xf32> to vector<4x1xf32>
    %117 = vector.broadcast %116 : vector<4x1xf32> to vector<4x2xf32>
    %118 = vector.extract_strided_slice %0 {offsets = [0, 39], sizes = [4, 1], strides = [1, 1]} : vector<4x128xf32> to vector<4x1xf32>
    %119 = vector.shape_cast %118 : vector<4x1xf32> to vector<4x1xf32>
    %120 = vector.broadcast %119 : vector<4x1xf32> to vector<4x2xf32>
    %121 = vector.extract_strided_slice %0 {offsets = [0, 40], sizes = [4, 1], strides = [1, 1]} : vector<4x128xf32> to vector<4x1xf32>
    %122 = vector.shape_cast %121 : vector<4x1xf32> to vector<4x1xf32>
    %123 = vector.broadcast %122 : vector<4x1xf32> to vector<4x2xf32>
    %124 = vector.extract_strided_slice %0 {offsets = [0, 41], sizes = [4, 1], strides = [1, 1]} : vector<4x128xf32> to vector<4x1xf32>
    %125 = vector.shape_cast %124 : vector<4x1xf32> to vector<4x1xf32>
    %126 = vector.broadcast %125 : vector<4x1xf32> to vector<4x2xf32>
    %127 = vector.extract_strided_slice %0 {offsets = [0, 42], sizes = [4, 1], strides = [1, 1]} : vector<4x128xf32> to vector<4x1xf32>
    %128 = vector.shape_cast %127 : vector<4x1xf32> to vector<4x1xf32>
    %129 = vector.broadcast %128 : vector<4x1xf32> to vector<4x2xf32>
    %130 = vector.extract_strided_slice %0 {offsets = [0, 43], sizes = [4, 1], strides = [1, 1]} : vector<4x128xf32> to vector<4x1xf32>
    %131 = vector.shape_cast %130 : vector<4x1xf32> to vector<4x1xf32>
    %132 = vector.broadcast %131 : vector<4x1xf32> to vector<4x2xf32>
    %133 = vector.extract_strided_slice %0 {offsets = [0, 44], sizes = [4, 1], strides = [1, 1]} : vector<4x128xf32> to vector<4x1xf32>
    %134 = vector.shape_cast %133 : vector<4x1xf32> to vector<4x1xf32>
    %135 = vector.broadcast %134 : vector<4x1xf32> to vector<4x2xf32>
    %136 = vector.extract_strided_slice %0 {offsets = [0, 45], sizes = [4, 1], strides = [1, 1]} : vector<4x128xf32> to vector<4x1xf32>
    %137 = vector.shape_cast %136 : vector<4x1xf32> to vector<4x1xf32>
    %138 = vector.broadcast %137 : vector<4x1xf32> to vector<4x2xf32>
    %139 = vector.extract_strided_slice %0 {offsets = [0, 46], sizes = [4, 1], strides = [1, 1]} : vector<4x128xf32> to vector<4x1xf32>
    %140 = vector.shape_cast %139 : vector<4x1xf32> to vector<4x1xf32>
    %141 = vector.broadcast %140 : vector<4x1xf32> to vector<4x2xf32>
    %142 = vector.extract_strided_slice %0 {offsets = [0, 47], sizes = [4, 1], strides = [1, 1]} : vector<4x128xf32> to vector<4x1xf32>
    %143 = vector.shape_cast %142 : vector<4x1xf32> to vector<4x1xf32>
    %144 = vector.broadcast %143 : vector<4x1xf32> to vector<4x2xf32>
    %145 = vector.extract_strided_slice %0 {offsets = [0, 48], sizes = [4, 1], strides = [1, 1]} : vector<4x128xf32> to vector<4x1xf32>
    %146 = vector.shape_cast %145 : vector<4x1xf32> to vector<4x1xf32>
    %147 = vector.broadcast %146 : vector<4x1xf32> to vector<4x2xf32>
    %148 = vector.extract_strided_slice %0 {offsets = [0, 49], sizes = [4, 1], strides = [1, 1]} : vector<4x128xf32> to vector<4x1xf32>
    %149 = vector.shape_cast %148 : vector<4x1xf32> to vector<4x1xf32>
    %150 = vector.broadcast %149 : vector<4x1xf32> to vector<4x2xf32>
    %151 = vector.extract_strided_slice %0 {offsets = [0, 50], sizes = [4, 1], strides = [1, 1]} : vector<4x128xf32> to vector<4x1xf32>
    %152 = vector.shape_cast %151 : vector<4x1xf32> to vector<4x1xf32>
    %153 = vector.broadcast %152 : vector<4x1xf32> to vector<4x2xf32>
    %154 = vector.extract_strided_slice %0 {offsets = [0, 51], sizes = [4, 1], strides = [1, 1]} : vector<4x128xf32> to vector<4x1xf32>
    %155 = vector.shape_cast %154 : vector<4x1xf32> to vector<4x1xf32>
    %156 = vector.broadcast %155 : vector<4x1xf32> to vector<4x2xf32>
    %157 = vector.extract_strided_slice %0 {offsets = [0, 52], sizes = [4, 1], strides = [1, 1]} : vector<4x128xf32> to vector<4x1xf32>
    %158 = vector.shape_cast %157 : vector<4x1xf32> to vector<4x1xf32>
    %159 = vector.broadcast %158 : vector<4x1xf32> to vector<4x2xf32>
    %160 = vector.extract_strided_slice %0 {offsets = [0, 53], sizes = [4, 1], strides = [1, 1]} : vector<4x128xf32> to vector<4x1xf32>
    %161 = vector.shape_cast %160 : vector<4x1xf32> to vector<4x1xf32>
    %162 = vector.broadcast %161 : vector<4x1xf32> to vector<4x2xf32>
    %163 = vector.extract_strided_slice %0 {offsets = [0, 54], sizes = [4, 1], strides = [1, 1]} : vector<4x128xf32> to vector<4x1xf32>
    %164 = vector.shape_cast %163 : vector<4x1xf32> to vector<4x1xf32>
    %165 = vector.broadcast %164 : vector<4x1xf32> to vector<4x2xf32>
    %166 = vector.extract_strided_slice %0 {offsets = [0, 55], sizes = [4, 1], strides = [1, 1]} : vector<4x128xf32> to vector<4x1xf32>
    %167 = vector.shape_cast %166 : vector<4x1xf32> to vector<4x1xf32>
    %168 = vector.broadcast %167 : vector<4x1xf32> to vector<4x2xf32>
    %169 = vector.extract_strided_slice %0 {offsets = [0, 56], sizes = [4, 1], strides = [1, 1]} : vector<4x128xf32> to vector<4x1xf32>
    %170 = vector.shape_cast %169 : vector<4x1xf32> to vector<4x1xf32>
    %171 = vector.broadcast %170 : vector<4x1xf32> to vector<4x2xf32>
    %172 = vector.extract_strided_slice %0 {offsets = [0, 57], sizes = [4, 1], strides = [1, 1]} : vector<4x128xf32> to vector<4x1xf32>
    %173 = vector.shape_cast %172 : vector<4x1xf32> to vector<4x1xf32>
    %174 = vector.broadcast %173 : vector<4x1xf32> to vector<4x2xf32>
    %175 = vector.extract_strided_slice %0 {offsets = [0, 58], sizes = [4, 1], strides = [1, 1]} : vector<4x128xf32> to vector<4x1xf32>
    %176 = vector.shape_cast %175 : vector<4x1xf32> to vector<4x1xf32>
    %177 = vector.broadcast %176 : vector<4x1xf32> to vector<4x2xf32>
    %178 = vector.extract_strided_slice %0 {offsets = [0, 59], sizes = [4, 1], strides = [1, 1]} : vector<4x128xf32> to vector<4x1xf32>
    %179 = vector.shape_cast %178 : vector<4x1xf32> to vector<4x1xf32>
    %180 = vector.broadcast %179 : vector<4x1xf32> to vector<4x2xf32>
    %181 = vector.extract_strided_slice %0 {offsets = [0, 60], sizes = [4, 1], strides = [1, 1]} : vector<4x128xf32> to vector<4x1xf32>
    %182 = vector.shape_cast %181 : vector<4x1xf32> to vector<4x1xf32>
    %183 = vector.broadcast %182 : vector<4x1xf32> to vector<4x2xf32>
    %184 = vector.extract_strided_slice %0 {offsets = [0, 61], sizes = [4, 1], strides = [1, 1]} : vector<4x128xf32> to vector<4x1xf32>
    %185 = vector.shape_cast %184 : vector<4x1xf32> to vector<4x1xf32>
    %186 = vector.broadcast %185 : vector<4x1xf32> to vector<4x2xf32>
    %187 = vector.extract_strided_slice %0 {offsets = [0, 62], sizes = [4, 1], strides = [1, 1]} : vector<4x128xf32> to vector<4x1xf32>
    %188 = vector.shape_cast %187 : vector<4x1xf32> to vector<4x1xf32>
    %189 = vector.broadcast %188 : vector<4x1xf32> to vector<4x2xf32>
    %190 = vector.extract_strided_slice %0 {offsets = [0, 63], sizes = [4, 1], strides = [1, 1]} : vector<4x128xf32> to vector<4x1xf32>
    %191 = vector.shape_cast %190 : vector<4x1xf32> to vector<4x1xf32>
    %192 = vector.broadcast %191 : vector<4x1xf32> to vector<4x2xf32>
    %193 = vector.extract_strided_slice %0 {offsets = [0, 64], sizes = [4, 1], strides = [1, 1]} : vector<4x128xf32> to vector<4x1xf32>
    %194 = vector.shape_cast %193 : vector<4x1xf32> to vector<4x1xf32>
    %195 = vector.broadcast %194 : vector<4x1xf32> to vector<4x2xf32>
    %196 = vector.extract_strided_slice %0 {offsets = [0, 65], sizes = [4, 1], strides = [1, 1]} : vector<4x128xf32> to vector<4x1xf32>
    %197 = vector.shape_cast %196 : vector<4x1xf32> to vector<4x1xf32>
    %198 = vector.broadcast %197 : vector<4x1xf32> to vector<4x2xf32>
    %199 = vector.extract_strided_slice %0 {offsets = [0, 66], sizes = [4, 1], strides = [1, 1]} : vector<4x128xf32> to vector<4x1xf32>
    %200 = vector.shape_cast %199 : vector<4x1xf32> to vector<4x1xf32>
    %201 = vector.broadcast %200 : vector<4x1xf32> to vector<4x2xf32>
    %202 = vector.extract_strided_slice %0 {offsets = [0, 67], sizes = [4, 1], strides = [1, 1]} : vector<4x128xf32> to vector<4x1xf32>
    %203 = vector.shape_cast %202 : vector<4x1xf32> to vector<4x1xf32>
    %204 = vector.broadcast %203 : vector<4x1xf32> to vector<4x2xf32>
    %205 = vector.extract_strided_slice %0 {offsets = [0, 68], sizes = [4, 1], strides = [1, 1]} : vector<4x128xf32> to vector<4x1xf32>
    %206 = vector.shape_cast %205 : vector<4x1xf32> to vector<4x1xf32>
    %207 = vector.broadcast %206 : vector<4x1xf32> to vector<4x2xf32>
    %208 = vector.extract_strided_slice %0 {offsets = [0, 69], sizes = [4, 1], strides = [1, 1]} : vector<4x128xf32> to vector<4x1xf32>
    %209 = vector.shape_cast %208 : vector<4x1xf32> to vector<4x1xf32>
    %210 = vector.broadcast %209 : vector<4x1xf32> to vector<4x2xf32>
    %211 = vector.extract_strided_slice %0 {offsets = [0, 70], sizes = [4, 1], strides = [1, 1]} : vector<4x128xf32> to vector<4x1xf32>
    %212 = vector.shape_cast %211 : vector<4x1xf32> to vector<4x1xf32>
    %213 = vector.broadcast %212 : vector<4x1xf32> to vector<4x2xf32>
    %214 = vector.extract_strided_slice %0 {offsets = [0, 71], sizes = [4, 1], strides = [1, 1]} : vector<4x128xf32> to vector<4x1xf32>
    %215 = vector.shape_cast %214 : vector<4x1xf32> to vector<4x1xf32>
    %216 = vector.broadcast %215 : vector<4x1xf32> to vector<4x2xf32>
    %217 = vector.extract_strided_slice %0 {offsets = [0, 72], sizes = [4, 1], strides = [1, 1]} : vector<4x128xf32> to vector<4x1xf32>
    %218 = vector.shape_cast %217 : vector<4x1xf32> to vector<4x1xf32>
    %219 = vector.broadcast %218 : vector<4x1xf32> to vector<4x2xf32>
    %220 = vector.extract_strided_slice %0 {offsets = [0, 73], sizes = [4, 1], strides = [1, 1]} : vector<4x128xf32> to vector<4x1xf32>
    %221 = vector.shape_cast %220 : vector<4x1xf32> to vector<4x1xf32>
    %222 = vector.broadcast %221 : vector<4x1xf32> to vector<4x2xf32>
    %223 = vector.extract_strided_slice %0 {offsets = [0, 74], sizes = [4, 1], strides = [1, 1]} : vector<4x128xf32> to vector<4x1xf32>
    %224 = vector.shape_cast %223 : vector<4x1xf32> to vector<4x1xf32>
    %225 = vector.broadcast %224 : vector<4x1xf32> to vector<4x2xf32>
    %226 = vector.extract_strided_slice %0 {offsets = [0, 75], sizes = [4, 1], strides = [1, 1]} : vector<4x128xf32> to vector<4x1xf32>
    %227 = vector.shape_cast %226 : vector<4x1xf32> to vector<4x1xf32>
    %228 = vector.broadcast %227 : vector<4x1xf32> to vector<4x2xf32>
    %229 = vector.extract_strided_slice %0 {offsets = [0, 76], sizes = [4, 1], strides = [1, 1]} : vector<4x128xf32> to vector<4x1xf32>
    %230 = vector.shape_cast %229 : vector<4x1xf32> to vector<4x1xf32>
    %231 = vector.broadcast %230 : vector<4x1xf32> to vector<4x2xf32>
    %232 = vector.extract_strided_slice %0 {offsets = [0, 77], sizes = [4, 1], strides = [1, 1]} : vector<4x128xf32> to vector<4x1xf32>
    %233 = vector.shape_cast %232 : vector<4x1xf32> to vector<4x1xf32>
    %234 = vector.broadcast %233 : vector<4x1xf32> to vector<4x2xf32>
    %235 = vector.extract_strided_slice %0 {offsets = [0, 78], sizes = [4, 1], strides = [1, 1]} : vector<4x128xf32> to vector<4x1xf32>
    %236 = vector.shape_cast %235 : vector<4x1xf32> to vector<4x1xf32>
    %237 = vector.broadcast %236 : vector<4x1xf32> to vector<4x2xf32>
    %238 = vector.extract_strided_slice %0 {offsets = [0, 79], sizes = [4, 1], strides = [1, 1]} : vector<4x128xf32> to vector<4x1xf32>
    %239 = vector.shape_cast %238 : vector<4x1xf32> to vector<4x1xf32>
    %240 = vector.broadcast %239 : vector<4x1xf32> to vector<4x2xf32>
    %241 = vector.extract_strided_slice %0 {offsets = [0, 80], sizes = [4, 1], strides = [1, 1]} : vector<4x128xf32> to vector<4x1xf32>
    %242 = vector.shape_cast %241 : vector<4x1xf32> to vector<4x1xf32>
    %243 = vector.broadcast %242 : vector<4x1xf32> to vector<4x2xf32>
    %244 = vector.extract_strided_slice %0 {offsets = [0, 81], sizes = [4, 1], strides = [1, 1]} : vector<4x128xf32> to vector<4x1xf32>
    %245 = vector.shape_cast %244 : vector<4x1xf32> to vector<4x1xf32>
    %246 = vector.broadcast %245 : vector<4x1xf32> to vector<4x2xf32>
    %247 = vector.extract_strided_slice %0 {offsets = [0, 82], sizes = [4, 1], strides = [1, 1]} : vector<4x128xf32> to vector<4x1xf32>
    %248 = vector.shape_cast %247 : vector<4x1xf32> to vector<4x1xf32>
    %249 = vector.broadcast %248 : vector<4x1xf32> to vector<4x2xf32>
    %250 = vector.extract_strided_slice %0 {offsets = [0, 83], sizes = [4, 1], strides = [1, 1]} : vector<4x128xf32> to vector<4x1xf32>
    %251 = vector.shape_cast %250 : vector<4x1xf32> to vector<4x1xf32>
    %252 = vector.broadcast %251 : vector<4x1xf32> to vector<4x2xf32>
    %253 = vector.extract_strided_slice %0 {offsets = [0, 84], sizes = [4, 1], strides = [1, 1]} : vector<4x128xf32> to vector<4x1xf32>
    %254 = vector.shape_cast %253 : vector<4x1xf32> to vector<4x1xf32>
    %255 = vector.broadcast %254 : vector<4x1xf32> to vector<4x2xf32>
    %256 = vector.extract_strided_slice %0 {offsets = [0, 85], sizes = [4, 1], strides = [1, 1]} : vector<4x128xf32> to vector<4x1xf32>
    %257 = vector.shape_cast %256 : vector<4x1xf32> to vector<4x1xf32>
    %258 = vector.broadcast %257 : vector<4x1xf32> to vector<4x2xf32>
    %259 = vector.extract_strided_slice %0 {offsets = [0, 86], sizes = [4, 1], strides = [1, 1]} : vector<4x128xf32> to vector<4x1xf32>
    %260 = vector.shape_cast %259 : vector<4x1xf32> to vector<4x1xf32>
    %261 = vector.broadcast %260 : vector<4x1xf32> to vector<4x2xf32>
    %262 = vector.extract_strided_slice %0 {offsets = [0, 87], sizes = [4, 1], strides = [1, 1]} : vector<4x128xf32> to vector<4x1xf32>
    %263 = vector.shape_cast %262 : vector<4x1xf32> to vector<4x1xf32>
    %264 = vector.broadcast %263 : vector<4x1xf32> to vector<4x2xf32>
    %265 = vector.extract_strided_slice %0 {offsets = [0, 88], sizes = [4, 1], strides = [1, 1]} : vector<4x128xf32> to vector<4x1xf32>
    %266 = vector.shape_cast %265 : vector<4x1xf32> to vector<4x1xf32>
    %267 = vector.broadcast %266 : vector<4x1xf32> to vector<4x2xf32>
    %268 = vector.extract_strided_slice %0 {offsets = [0, 89], sizes = [4, 1], strides = [1, 1]} : vector<4x128xf32> to vector<4x1xf32>
    %269 = vector.shape_cast %268 : vector<4x1xf32> to vector<4x1xf32>
    %270 = vector.broadcast %269 : vector<4x1xf32> to vector<4x2xf32>
    %271 = vector.extract_strided_slice %0 {offsets = [0, 90], sizes = [4, 1], strides = [1, 1]} : vector<4x128xf32> to vector<4x1xf32>
    %272 = vector.shape_cast %271 : vector<4x1xf32> to vector<4x1xf32>
    %273 = vector.broadcast %272 : vector<4x1xf32> to vector<4x2xf32>
    %274 = vector.extract_strided_slice %0 {offsets = [0, 91], sizes = [4, 1], strides = [1, 1]} : vector<4x128xf32> to vector<4x1xf32>
    %275 = vector.shape_cast %274 : vector<4x1xf32> to vector<4x1xf32>
    %276 = vector.broadcast %275 : vector<4x1xf32> to vector<4x2xf32>
    %277 = vector.extract_strided_slice %0 {offsets = [0, 92], sizes = [4, 1], strides = [1, 1]} : vector<4x128xf32> to vector<4x1xf32>
    %278 = vector.shape_cast %277 : vector<4x1xf32> to vector<4x1xf32>
    %279 = vector.broadcast %278 : vector<4x1xf32> to vector<4x2xf32>
    %280 = vector.extract_strided_slice %0 {offsets = [0, 93], sizes = [4, 1], strides = [1, 1]} : vector<4x128xf32> to vector<4x1xf32>
    %281 = vector.shape_cast %280 : vector<4x1xf32> to vector<4x1xf32>
    %282 = vector.broadcast %281 : vector<4x1xf32> to vector<4x2xf32>
    %283 = vector.extract_strided_slice %0 {offsets = [0, 94], sizes = [4, 1], strides = [1, 1]} : vector<4x128xf32> to vector<4x1xf32>
    %284 = vector.shape_cast %283 : vector<4x1xf32> to vector<4x1xf32>
    %285 = vector.broadcast %284 : vector<4x1xf32> to vector<4x2xf32>
    %286 = vector.extract_strided_slice %0 {offsets = [0, 95], sizes = [4, 1], strides = [1, 1]} : vector<4x128xf32> to vector<4x1xf32>
    %287 = vector.shape_cast %286 : vector<4x1xf32> to vector<4x1xf32>
    %288 = vector.broadcast %287 : vector<4x1xf32> to vector<4x2xf32>
    %289 = vector.extract_strided_slice %0 {offsets = [0, 96], sizes = [4, 1], strides = [1, 1]} : vector<4x128xf32> to vector<4x1xf32>
    %290 = vector.shape_cast %289 : vector<4x1xf32> to vector<4x1xf32>
    %291 = vector.broadcast %290 : vector<4x1xf32> to vector<4x2xf32>
    %292 = vector.extract_strided_slice %0 {offsets = [0, 97], sizes = [4, 1], strides = [1, 1]} : vector<4x128xf32> to vector<4x1xf32>
    %293 = vector.shape_cast %292 : vector<4x1xf32> to vector<4x1xf32>
    %294 = vector.broadcast %293 : vector<4x1xf32> to vector<4x2xf32>
    %295 = vector.extract_strided_slice %0 {offsets = [0, 98], sizes = [4, 1], strides = [1, 1]} : vector<4x128xf32> to vector<4x1xf32>
    %296 = vector.shape_cast %295 : vector<4x1xf32> to vector<4x1xf32>
    %297 = vector.broadcast %296 : vector<4x1xf32> to vector<4x2xf32>
    %298 = vector.extract_strided_slice %0 {offsets = [0, 99], sizes = [4, 1], strides = [1, 1]} : vector<4x128xf32> to vector<4x1xf32>
    %299 = vector.shape_cast %298 : vector<4x1xf32> to vector<4x1xf32>
    %300 = vector.broadcast %299 : vector<4x1xf32> to vector<4x2xf32>
    %301 = vector.extract_strided_slice %0 {offsets = [0, 100], sizes = [4, 1], strides = [1, 1]} : vector<4x128xf32> to vector<4x1xf32>
    %302 = vector.shape_cast %301 : vector<4x1xf32> to vector<4x1xf32>
    %303 = vector.broadcast %302 : vector<4x1xf32> to vector<4x2xf32>
    %304 = vector.extract_strided_slice %0 {offsets = [0, 101], sizes = [4, 1], strides = [1, 1]} : vector<4x128xf32> to vector<4x1xf32>
    %305 = vector.shape_cast %304 : vector<4x1xf32> to vector<4x1xf32>
    %306 = vector.broadcast %305 : vector<4x1xf32> to vector<4x2xf32>
    %307 = vector.extract_strided_slice %0 {offsets = [0, 102], sizes = [4, 1], strides = [1, 1]} : vector<4x128xf32> to vector<4x1xf32>
    %308 = vector.shape_cast %307 : vector<4x1xf32> to vector<4x1xf32>
    %309 = vector.broadcast %308 : vector<4x1xf32> to vector<4x2xf32>
    %310 = vector.extract_strided_slice %0 {offsets = [0, 103], sizes = [4, 1], strides = [1, 1]} : vector<4x128xf32> to vector<4x1xf32>
    %311 = vector.shape_cast %310 : vector<4x1xf32> to vector<4x1xf32>
    %312 = vector.broadcast %311 : vector<4x1xf32> to vector<4x2xf32>
    %313 = vector.extract_strided_slice %0 {offsets = [0, 104], sizes = [4, 1], strides = [1, 1]} : vector<4x128xf32> to vector<4x1xf32>
    %314 = vector.shape_cast %313 : vector<4x1xf32> to vector<4x1xf32>
    %315 = vector.broadcast %314 : vector<4x1xf32> to vector<4x2xf32>
    %316 = vector.extract_strided_slice %0 {offsets = [0, 105], sizes = [4, 1], strides = [1, 1]} : vector<4x128xf32> to vector<4x1xf32>
    %317 = vector.shape_cast %316 : vector<4x1xf32> to vector<4x1xf32>
    %318 = vector.broadcast %317 : vector<4x1xf32> to vector<4x2xf32>
    %319 = vector.extract_strided_slice %0 {offsets = [0, 106], sizes = [4, 1], strides = [1, 1]} : vector<4x128xf32> to vector<4x1xf32>
    %320 = vector.shape_cast %319 : vector<4x1xf32> to vector<4x1xf32>
    %321 = vector.broadcast %320 : vector<4x1xf32> to vector<4x2xf32>
    %322 = vector.extract_strided_slice %0 {offsets = [0, 107], sizes = [4, 1], strides = [1, 1]} : vector<4x128xf32> to vector<4x1xf32>
    %323 = vector.shape_cast %322 : vector<4x1xf32> to vector<4x1xf32>
    %324 = vector.broadcast %323 : vector<4x1xf32> to vector<4x2xf32>
    %325 = vector.extract_strided_slice %0 {offsets = [0, 108], sizes = [4, 1], strides = [1, 1]} : vector<4x128xf32> to vector<4x1xf32>
    %326 = vector.shape_cast %325 : vector<4x1xf32> to vector<4x1xf32>
    %327 = vector.broadcast %326 : vector<4x1xf32> to vector<4x2xf32>
    %328 = vector.extract_strided_slice %0 {offsets = [0, 109], sizes = [4, 1], strides = [1, 1]} : vector<4x128xf32> to vector<4x1xf32>
    %329 = vector.shape_cast %328 : vector<4x1xf32> to vector<4x1xf32>
    %330 = vector.broadcast %329 : vector<4x1xf32> to vector<4x2xf32>
    %331 = vector.extract_strided_slice %0 {offsets = [0, 110], sizes = [4, 1], strides = [1, 1]} : vector<4x128xf32> to vector<4x1xf32>
    %332 = vector.shape_cast %331 : vector<4x1xf32> to vector<4x1xf32>
    %333 = vector.broadcast %332 : vector<4x1xf32> to vector<4x2xf32>
    %334 = vector.extract_strided_slice %0 {offsets = [0, 111], sizes = [4, 1], strides = [1, 1]} : vector<4x128xf32> to vector<4x1xf32>
    %335 = vector.shape_cast %334 : vector<4x1xf32> to vector<4x1xf32>
    %336 = vector.broadcast %335 : vector<4x1xf32> to vector<4x2xf32>
    %337 = vector.extract_strided_slice %0 {offsets = [0, 112], sizes = [4, 1], strides = [1, 1]} : vector<4x128xf32> to vector<4x1xf32>
    %338 = vector.shape_cast %337 : vector<4x1xf32> to vector<4x1xf32>
    %339 = vector.broadcast %338 : vector<4x1xf32> to vector<4x2xf32>
    %340 = vector.extract_strided_slice %0 {offsets = [0, 113], sizes = [4, 1], strides = [1, 1]} : vector<4x128xf32> to vector<4x1xf32>
    %341 = vector.shape_cast %340 : vector<4x1xf32> to vector<4x1xf32>
    %342 = vector.broadcast %341 : vector<4x1xf32> to vector<4x2xf32>
    %343 = vector.extract_strided_slice %0 {offsets = [0, 114], sizes = [4, 1], strides = [1, 1]} : vector<4x128xf32> to vector<4x1xf32>
    %344 = vector.shape_cast %343 : vector<4x1xf32> to vector<4x1xf32>
    %345 = vector.broadcast %344 : vector<4x1xf32> to vector<4x2xf32>
    %346 = vector.extract_strided_slice %0 {offsets = [0, 115], sizes = [4, 1], strides = [1, 1]} : vector<4x128xf32> to vector<4x1xf32>
    %347 = vector.shape_cast %346 : vector<4x1xf32> to vector<4x1xf32>
    %348 = vector.broadcast %347 : vector<4x1xf32> to vector<4x2xf32>
    %349 = vector.extract_strided_slice %0 {offsets = [0, 116], sizes = [4, 1], strides = [1, 1]} : vector<4x128xf32> to vector<4x1xf32>
    %350 = vector.shape_cast %349 : vector<4x1xf32> to vector<4x1xf32>
    %351 = vector.broadcast %350 : vector<4x1xf32> to vector<4x2xf32>
    %352 = vector.extract_strided_slice %0 {offsets = [0, 117], sizes = [4, 1], strides = [1, 1]} : vector<4x128xf32> to vector<4x1xf32>
    %353 = vector.shape_cast %352 : vector<4x1xf32> to vector<4x1xf32>
    %354 = vector.broadcast %353 : vector<4x1xf32> to vector<4x2xf32>
    %355 = vector.extract_strided_slice %0 {offsets = [0, 118], sizes = [4, 1], strides = [1, 1]} : vector<4x128xf32> to vector<4x1xf32>
    %356 = vector.shape_cast %355 : vector<4x1xf32> to vector<4x1xf32>
    %357 = vector.broadcast %356 : vector<4x1xf32> to vector<4x2xf32>
    %358 = vector.extract_strided_slice %0 {offsets = [0, 119], sizes = [4, 1], strides = [1, 1]} : vector<4x128xf32> to vector<4x1xf32>
    %359 = vector.shape_cast %358 : vector<4x1xf32> to vector<4x1xf32>
    %360 = vector.broadcast %359 : vector<4x1xf32> to vector<4x2xf32>
    %361 = vector.extract_strided_slice %0 {offsets = [0, 120], sizes = [4, 1], strides = [1, 1]} : vector<4x128xf32> to vector<4x1xf32>
    %362 = vector.shape_cast %361 : vector<4x1xf32> to vector<4x1xf32>
    %363 = vector.broadcast %362 : vector<4x1xf32> to vector<4x2xf32>
    %364 = vector.extract_strided_slice %0 {offsets = [0, 121], sizes = [4, 1], strides = [1, 1]} : vector<4x128xf32> to vector<4x1xf32>
    %365 = vector.shape_cast %364 : vector<4x1xf32> to vector<4x1xf32>
    %366 = vector.broadcast %365 : vector<4x1xf32> to vector<4x2xf32>
    %367 = vector.extract_strided_slice %0 {offsets = [0, 122], sizes = [4, 1], strides = [1, 1]} : vector<4x128xf32> to vector<4x1xf32>
    %368 = vector.shape_cast %367 : vector<4x1xf32> to vector<4x1xf32>
    %369 = vector.broadcast %368 : vector<4x1xf32> to vector<4x2xf32>
    %370 = vector.extract_strided_slice %0 {offsets = [0, 123], sizes = [4, 1], strides = [1, 1]} : vector<4x128xf32> to vector<4x1xf32>
    %371 = vector.shape_cast %370 : vector<4x1xf32> to vector<4x1xf32>
    %372 = vector.broadcast %371 : vector<4x1xf32> to vector<4x2xf32>
    %373 = vector.extract_strided_slice %0 {offsets = [0, 124], sizes = [4, 1], strides = [1, 1]} : vector<4x128xf32> to vector<4x1xf32>
    %374 = vector.shape_cast %373 : vector<4x1xf32> to vector<4x1xf32>
    %375 = vector.broadcast %374 : vector<4x1xf32> to vector<4x2xf32>
    %376 = vector.extract_strided_slice %0 {offsets = [0, 125], sizes = [4, 1], strides = [1, 1]} : vector<4x128xf32> to vector<4x1xf32>
    %377 = vector.shape_cast %376 : vector<4x1xf32> to vector<4x1xf32>
    %378 = vector.broadcast %377 : vector<4x1xf32> to vector<4x2xf32>
    %379 = vector.extract_strided_slice %0 {offsets = [0, 126], sizes = [4, 1], strides = [1, 1]} : vector<4x128xf32> to vector<4x1xf32>
    %380 = vector.shape_cast %379 : vector<4x1xf32> to vector<4x1xf32>
    %381 = vector.broadcast %380 : vector<4x1xf32> to vector<4x2xf32>
    %382 = vector.extract_strided_slice %0 {offsets = [0, 127], sizes = [4, 1], strides = [1, 1]} : vector<4x128xf32> to vector<4x1xf32>
    %383 = vector.shape_cast %382 : vector<4x1xf32> to vector<4x1xf32>
    %384 = vector.broadcast %383 : vector<4x1xf32> to vector<4x2xf32>
    %385 = tpu.concatenate %3, %6, %9, %12, %15, %18, %21, %24, %27, %30, %33, %36, %39, %42, %45, %48 in 1 : vector<4x2xf32>, vector<4x2xf32>, vector<4x2xf32>, vector<4x2xf32>, vector<4x2xf32>, vector<4x2xf32>, vector<4x2xf32>, vector<4x2xf32>, vector<4x2xf32>, vector<4x2xf32>, vector<4x2xf32>, vector<4x2xf32>, vector<4x2xf32>, vector<4x2xf32>, vector<4x2xf32>, vector<4x2xf32> -> vector<4x32xf32>
    %386 = tpu.concatenate %51, %54, %57, %60, %63, %66, %69, %72, %75, %78, %81, %84, %87, %90, %93, %96 in 1 : vector<4x2xf32>, vector<4x2xf32>, vector<4x2xf32>, vector<4x2xf32>, vector<4x2xf32>, vector<4x2xf32>, vector<4x2xf32>, vector<4x2xf32>, vector<4x2xf32>, vector<4x2xf32>, vector<4x2xf32>, vector<4x2xf32>, vector<4x2xf32>, vector<4x2xf32>, vector<4x2xf32>, vector<4x2xf32> -> vector<4x32xf32>
    %387 = tpu.concatenate %99, %102, %105, %108, %111, %114, %117, %120, %123, %126, %129, %132, %135, %138, %141, %144 in 1 : vector<4x2xf32>, vector<4x2xf32>, vector<4x2xf32>, vector<4x2xf32>, vector<4x2xf32>, vector<4x2xf32>, vector<4x2xf32>, vector<4x2xf32>, vector<4x2xf32>, vector<4x2xf32>, vector<4x2xf32>, vector<4x2xf32>, vector<4x2xf32>, vector<4x2xf32>, vector<4x2xf32>, vector<4x2xf32> -> vector<4x32xf32>
    %388 = tpu.concatenate %147, %150, %153, %156, %159, %162, %165, %168, %171, %174, %177, %180, %183, %186, %189, %192 in 1 : vector<4x2xf32>, vector<4x2xf32>, vector<4x2xf32>, vector<4x2xf32>, vector<4x2xf32>, vector<4x2xf32>, vector<4x2xf32>, vector<4x2xf32>, vector<4x2xf32>, vector<4x2xf32>, vector<4x2xf32>, vector<4x2xf32>, vector<4x2xf32>, vector<4x2xf32>, vector<4x2xf32>, vector<4x2xf32> -> vector<4x32xf32>
    %389 = tpu.concatenate %195, %198, %201, %204, %207, %210, %213, %216, %219, %222, %225, %228, %231, %234, %237, %240 in 1 : vector<4x2xf32>, vector<4x2xf32>, vector<4x2xf32>, vector<4x2xf32>, vector<4x2xf32>, vector<4x2xf32>, vector<4x2xf32>, vector<4x2xf32>, vector<4x2xf32>, vector<4x2xf32>, vector<4x2xf32>, vector<4x2xf32>, vector<4x2xf32>, vector<4x2xf32>, vector<4x2xf32>, vector<4x2xf32> -> vector<4x32xf32>
    %390 = tpu.concatenate %243, %246, %249, %252, %255, %258, %261, %264, %267, %270, %273, %276, %279, %282, %285, %288 in 1 : vector<4x2xf32>, vector<4x2xf32>, vector<4x2xf32>, vector<4x2xf32>, vector<4x2xf32>, vector<4x2xf32>, vector<4x2xf32>, vector<4x2xf32>, vector<4x2xf32>, vector<4x2xf32>, vector<4x2xf32>, vector<4x2xf32>, vector<4x2xf32>, vector<4x2xf32>, vector<4x2xf32>, vector<4x2xf32> -> vector<4x32xf32>
    %391 = tpu.concatenate %291, %294, %297, %300, %303, %306, %309, %312, %315, %318, %321, %324, %327, %330, %333, %336 in 1 : vector<4x2xf32>, vector<4x2xf32>, vector<4x2xf32>, vector<4x2xf32>, vector<4x2xf32>, vector<4x2xf32>, vector<4x2xf32>, vector<4x2xf32>, vector<4x2xf32>, vector<4x2xf32>, vector<4x2xf32>, vector<4x2xf32>, vector<4x2xf32>, vector<4x2xf32>, vector<4x2xf32>, vector<4x2xf32> -> vector<4x32xf32>
    %392 = tpu.concatenate %339, %342, %345, %348, %351, %354, %357, %360, %363, %366, %369, %372, %375, %378, %381, %384 in 1 : vector<4x2xf32>, vector<4x2xf32>, vector<4x2xf32>, vector<4x2xf32>, vector<4x2xf32>, vector<4x2xf32>, vector<4x2xf32>, vector<4x2xf32>, vector<4x2xf32>, vector<4x2xf32>, vector<4x2xf32>, vector<4x2xf32>, vector<4x2xf32>, vector<4x2xf32>, vector<4x2xf32>, vector<4x2xf32> -> vector<4x32xf32>
    %393 = tpu.concatenate %385, %386, %387, %388, %389, %390, %391, %392 in 1 : vector<4x32xf32>, vector<4x32xf32>, vector<4x32xf32>, vector<4x32xf32>, vector<4x32xf32>, vector<4x32xf32>, vector<4x32xf32>, vector<4x32xf32> -> vector<4x256xf32>
    %c0_1 = arith.constant 0 : index
    %c0_2 = arith.constant 0 : index
    %394 = vector.load %arg2[%c0_1, %c0_2] : memref<4x256xf32, #tpu.memory_space<vmem>>, vector<4x256xf32>
    tpu.vector_store %arg2[%c0_1, %c0_2], %393 {strides = array<i32>} : memref<4x256xf32, #tpu.memory_space<vmem>>, vector<4x256xf32>,
    return
  }
  func.func @transform_0(%arg0: i32) -> (i32, i32) {
    %c0_i32 = arith.constant 0 : i32
    %c0_i32_0 = arith.constant 0 : i32
    return %arg0, %c0_i32 : i32, i32
  }
  func.func @transform_1(%arg0: i32) -> (i32, i32) {
    %c0_i32 = arith.constant 0 : i32
    %c0_i32_0 = arith.constant 0 : i32
    return %arg0, %c0_i32 : i32, i32
  }
}

</mosaic_0001>

<bundles_post_ra>
// kernel: tpu_custom_call.1
= control target key start
LH: loop header
LB: loop body
LE: loop exit
PB: predicated region body
PF: predicated region fallthrough
CT: control target
= control target key end

     0   :  { %6 = vsyncpa [#allocation3], 0  ;;  %s1434_s0 = inlined_call_operand.hbm [shape: f32[4,128], index: 0, kind: input, shape index: {}]   ;;  %s1435_s1 = inlined_call_operand.hbm [shape: f32[4,256], index: 1, kind: output, shape index: {}]  }
   0x1   :  { %7 = vsyncpa [#allocation4], 0  ;;  %s1030_s6 = smov [#allocation2]  }
   0x2   :  { %s14_s7 = sshll.u32 %s1030_s6, 4  ;;  %s15_s7 = int_to_ptr.vmem [resolvable:$true] %s14_s7 }
   0x3   :  { %s994_s8 = scalar_lea.vmem %s15_s7, 64  ;;  %p999_p1 = scmp.lt.s32.totalorder %s15_s7, %s15_s7 }
   0x4   :  { %p995_p0 = scmp.ne.s32.totalorder %s15_s7, %s994_s8  ;;  %p1000_p2 = scmp.lt.s32.totalorder %s994_s8, %s994_s8 }
   0x6   :  { %p1001_p3 = por %p1000_p2, %p999_p1 }
   0x8   :  { %p1002_p4 = pnand %p1001_p3, %p995_p0 }
   0xa   :  { %1005 = shalt.err (!%p1002_p4)
}
   0xb   :  { %17 = dma.hbm_to_vmem [thread:$0]  %s1434_s0, 64, %s15_s7, [#allocation3]  }
   0xc   :  { %1026 = dma.done.wait [#allocation3], 64  }
   0xd   :  { %1027 = vsyncadd [#allocation3], 4294967232  ;;  %v1031_v0 = vmov 2   ;;  %v1032_v1 = vmov 0   ;;  %v1176_v2 = vld [vmem:[#allocation2] sm:$0xf] }
   0xe   :  { %858 = vset.pattern.permute.xlu1 %v1031_v0  ;;  %856 = vset.pattern.permute.xlu0 %v1032_v1  ;;  %v1033_v3 = vmov 3   ;;  %v1034_v4 = vmov 1   ;;  %v1035_v5 = vmov 4   ;;  %v1036_v6 = vmov 5   ;;  %s1120_s0 = smov 32   ;;  %s1131_s11 = smov 64  }
   0xf   :  { %32 = vperm.xlu1 %858, %v1176_v2   ;;  %24 = vperm.xlu0 %856, %v1176_v2   ;;  %v1037_v7 = vmov 6   ;;  %v1038_v8 = vmov 8   ;;  %v1039_v9 = vmov 7   ;;  %v1040_v10 = vmov 11   ;;  %s1144_s12 = smov 96   ;;  %s1162_s13 = smov [#allocation5]  }
  0x10   :  { %v1041_v11 = vmov 9   ;;  %v1042_v12 = vmov 14   ;;  %v1043_v13 = vmov 10   ;;  %v1044_v14 = vmov 17   ;;  %s714_s14 = sshll.u32 %s1162_s13, 4  ;;  %s715_s14 = int_to_ptr.vmem [resolvable:$true] %s714_s14 }
  0x11   :  { %v1045_v15 = vmov 12   ;;  %v1046_v16 = vmov 20   ;;  %v1047_v17 = vmov 13   ;;  %v1048_v18 = vmov 23   ;;  %s1006_s15 = scalar_lea.vmem %s715_s14, 128  ;;  %p1011_p6 = scmp.lt.s32.totalorder %s715_s14, %s715_s14 }
  0x12   :  { %v1049_v19 = vmov 15   ;;  %v1050_v20 = vmov 26   ;;  %v1051_v21 = vmov 16   ;;  %v1052_v22 = vmov 29   ;;  %p1007_p5 = scmp.ne.s32.totalorder %s715_s14, %s1006_s15  ;;  %p1012_p7 = scmp.lt.s32.totalorder %s1006_s15, %s1006_s15 }
  0x13   :  { %859 = vset.pattern.permute.xlu1 %v1033_v3  ;;  %857 = vset.pattern.permute.xlu0 %v1034_v4  ;;  %v1053_v23 = vmov 18   ;;  %v1054_v24 = vmov 32   ;;  %v1055_v25 = vmov 19   ;;  %v1056_v26 = vmov 35  }
  0x14   :  { %36 = vperm.xlu1 %859, %v1176_v2   ;;  %28 = vperm.xlu0 %857, %v1176_v2   ;;  %v1057_v27 = vmov 21   ;;  %v1058_v28 = vmov 38   ;;  %v1059_v29 = vmov 22   ;;  %v1060_v30 = vmov 41   ;;  %p1013_p8 = por %p1012_p7, %p1011_p6 }
  0x15   :  { %v1061_v31 = vmov 24   ;;  %v1062_v32 = vmov 44   ;;  %v1063_v33 = vmov 25   ;;  %v1064_v34 = vmov 47  }
  0x16   :  { %v1065_v35 = vmov 27   ;;  %v1066_v36 = vmov 50   ;;  %v1067_v37 = vmov 28   ;;  %v1068_v38 = vmov 53   ;;  %p1014_p9 = pnand %p1013_p8, %p1007_p5 }
  0x17   :  { %v1069_v39 = vmov 30   ;;  %v1070_v40 = vmov 56   ;;  %v1071_v41 = vmov 31   ;;  %v1072_v42 = vmov 59  }
  0x18   :  { %860 = vset.pattern.permute.xlu1 %v1035_v5  ;;  %861 = vset.pattern.permute.xlu0 %v1036_v6  ;;  %v1073_v43 = vmov 33   ;;  %v1074_v44 = vmov 62   ;;  %v1075_v45 = vmov 34   ;;  %v1076_v46 = vmov 65  }
  0x19   :  { %40 = vperm.xlu1 %860, %v1176_v2   ;;  %44 = vperm.xlu0 %861, %v1176_v2   ;;  %v1077_v47 = vmov 36   ;;  %v1078_v48 = vmov 68   ;;  %v1079_v49 = vmov 37   ;;  %v1080_v50 = vmov 71  }
  0x1a   :  { %v1081_v53 = vmov 39   ;;  %v1082_v54 = vmov 74   ;;  %vm535_vm0 = vcmask 15360   ;;  %vm537_vm1 = vcmask 31744  }
  0x1b   :  { %v1083_v58 = vmov 40   ;;  %v1084_v59 = vmov 77   ;;  %vm539_vm2 = vcmask 48128   ;;  %vm541_vm3 = vcmask 64512  }
  0x1c   :  { %vm543_vm4 = vcmask 80896   ;;  %v1085_v1 = vmov 42   ;;  %v1086_v3 = vmov 80   ;;  %v1087_v6 = vmov 43  }
  0x1d   :  { %862 = vset.pattern.permute.xlu1 %v1037_v7  ;;  %864 = vset.pattern.permute.xlu0 %v1038_v8  ;;  %v1088_v7 = vmov 83   ;;  %vm545_vm5 = vcmask 97280   ;;  %vm547_vm6 = vcmask 113664   ;;  %vm549_vm7 = vcmask 130048  }
  0x1e   :  { %48 = vperm.xlu1 %862, %v1176_v2   ;;  %56 = vperm.xlu0 %864, %v1176_v2   ;;  %vm551_vm8 = vcmask 146432   ;;  %vm553_vm9 = vcmask 162816   ;;  %vm555_vm10 = vcmask 179200   ;;  %vm557_vm11 = vcmask 195584  }
  0x1f   :  { %vm559_vm12 = vcmask 211968   ;;  %vm561_vm13 = vcmask 228352   ;;  %vm563_vm14 = vcmask 244736   ;;  %vm694_vm15 = vcmask 261120  }
  0x22   :  { %863 = vset.pattern.permute.xlu1 %v1039_v9  ;;  %867 = vset.pattern.permute.xlu0 %v1040_v10 }
  0x23   :  { %52 = vperm.xlu1 %863, %v1176_v2   ;;  %68 = vperm.xlu0 %867, %v1176_v2  }
  0x27   :  { %865 = vset.pattern.permute.xlu1 %v1041_v11  ;;  %870 = vset.pattern.permute.xlu0 %v1042_v12  ;;  %v1089_v12 = vmov 45  }
  0x28   :  { %60 = vperm.xlu1 %865, %v1176_v2   ;;  %80 = vperm.xlu0 %870, %v1176_v2  }
  0x2c   :  { %866 = vset.pattern.permute.xlu1 %v1043_v13  ;;  %873 = vset.pattern.permute.xlu0 %v1044_v14  ;;  %v1090_v13 = vmov 86  }
  0x2d   :  { %64 = vperm.xlu1 %866, %v1176_v2   ;;  %92 = vperm.xlu0 %873, %v1176_v2  }
  0x31   :  { %868 = vset.pattern.permute.xlu1 %v1045_v15  ;;  %876 = vset.pattern.permute.xlu0 %v1046_v16  ;;  %v1091_v16 = vmov 46  }
  0x32   :  { %72 = vperm.xlu1 %868, %v1176_v2   ;;  %104 = vperm.xlu0 %876, %v1176_v2  }
  0x36   :  { %869 = vset.pattern.permute.xlu1 %v1047_v17  ;;  %879 = vset.pattern.permute.xlu0 %v1048_v18  ;;  %v1092_v17 = vmov 89  }
  0x37   :  { %76 = vperm.xlu1 %869, %v1176_v2   ;;  %116 = vperm.xlu0 %879, %v1176_v2  }
  0x3b   :  { %871 = vset.pattern.permute.xlu1 %v1049_v19  ;;  %882 = vset.pattern.permute.xlu0 %v1050_v20 }
  0x3c   :  { %84 = vperm.xlu1 %871, %v1176_v2   ;;  %128 = vperm.xlu0 %882, %v1176_v2  }
  0x40   :  { %872 = vset.pattern.permute.xlu1 %v1051_v21  ;;  %885 = vset.pattern.permute.xlu0 %v1052_v22  ;;  %v1093_v22 = vmov 48  }
  0x41   :  { %88 = vperm.xlu1 %872, %v1176_v2   ;;  %140 = vperm.xlu0 %885, %v1176_v2  }
  0x45   :  { %874 = vset.pattern.permute.xlu1 %v1053_v23  ;;  %888 = vset.pattern.permute.xlu0 %v1054_v24  ;;  %v1094_v23 = vmov 92  }
  0x46   :  { %96 = vperm.xlu1 %874, %v1176_v2   ;;  %152 = vperm.xlu0 %888, %v1176_v2  }
  0x4a   :  { %875 = vset.pattern.permute.xlu1 %v1055_v25  ;;  %891 = vset.pattern.permute.xlu0 %v1056_v26  ;;  %v1095_v26 = vmov 49  }
  0x4b   :  { %100 = vperm.xlu1 %875, %v1176_v2   ;;  %164 = vperm.xlu0 %891, %v1176_v2  }
  0x4f   :  { %877 = vset.pattern.permute.xlu1 %v1057_v27  ;;  %894 = vset.pattern.permute.xlu0 %v1058_v28  ;;  %v1096_v27 = vmov 95  }
  0x50   :  { %108 = vperm.xlu1 %877, %v1176_v2   ;;  %176 = vperm.xlu0 %894, %v1176_v2  }
  0x54   :  { %878 = vset.pattern.permute.xlu1 %v1059_v29  ;;  %897 = vset.pattern.permute.xlu0 %v1060_v30 }
  0x55   :  { %112 = vperm.xlu1 %878, %v1176_v2   ;;  %188 = vperm.xlu0 %897, %v1176_v2  }
  0x59   :  { %880 = vset.pattern.permute.xlu1 %v1061_v31  ;;  %900 = vset.pattern.permute.xlu0 %v1062_v32  ;;  %v1097_v32 = vmov 51  }
  0x5a   :  { %120 = vperm.xlu1 %880, %v1176_v2   ;;  %200 = vperm.xlu0 %900, %v1176_v2  }
  0x5e   :  { %881 = vset.pattern.permute.xlu1 %v1063_v33  ;;  %903 = vset.pattern.permute.xlu0 %v1064_v34  ;;  %v1098_v33 = vmov 98  }
  0x5f   :  { %124 = vperm.xlu1 %881, %v1176_v2   ;;  %212 = vperm.xlu0 %903, %v1176_v2  }
  0x63   :  { %883 = vset.pattern.permute.xlu1 %v1065_v35  ;;  %906 = vset.pattern.permute.xlu0 %v1066_v36  ;;  %v1099_v36 = vmov 52  }
  0x64   :  { %132 = vperm.xlu1 %883, %v1176_v2   ;;  %224 = vperm.xlu0 %906, %v1176_v2  }
  0x68   :  { %884 = vset.pattern.permute.xlu1 %v1067_v37  ;;  %909 = vset.pattern.permute.xlu0 %v1068_v38  ;;  %v1100_v37 = vmov 99  }
  0x69   :  { %136 = vperm.xlu1 %884, %v1176_v2   ;;  %236 = vperm.xlu0 %909, %v1176_v2  }
  0x6d   :  { %886 = vset.pattern.permute.xlu1 %v1069_v39  ;;  %912 = vset.pattern.permute.xlu0 %v1070_v40  ;;  %v1101_v39 = vmov 54   ;;  %v1102_v40 = vmov 115  }
  0x6e   :  { %144 = vperm.xlu1 %886, %v1176_v2   ;;  %248 = vperm.xlu0 %912, %v1176_v2  }
  0x72   :  { %887 = vset.pattern.permute.xlu1 %v1071_v41  ;;  %915 = vset.pattern.permute.xlu0 %v1072_v42  ;;  %v1103_v42 = vmov 55  }
  0x73   :  { %148 = vperm.xlu1 %887, %v1176_v2   ;;  %260 = vperm.xlu0 %915, %v1176_v2  }
  0x77   :  { %889 = vset.pattern.permute.xlu1 %v1073_v43  ;;  %918 = vset.pattern.permute.xlu0 %v1074_v44  ;;  %v1104_v43 = vmov 102  }
  0x78   :  { %156 = vperm.xlu1 %889, %v1176_v2   ;;  %272 = vperm.xlu0 %918, %v1176_v2  }
  0x7c   :  { %890 = vset.pattern.permute.xlu1 %v1075_v45  ;;  %921 = vset.pattern.permute.xlu0 %v1076_v46  ;;  %v1105_v45 = vmov 57   ;;  %v1106_v46 = vmov 118  }
  0x7d   :  { %160 = vperm.xlu1 %890, %v1176_v2   ;;  %284 = vperm.xlu0 %921, %v1176_v2  }
  0x81   :  { %892 = vset.pattern.permute.xlu1 %v1077_v47  ;;  %924 = vset.pattern.permute.xlu0 %v1078_v48  ;;  %v1107_v48 = vmov 58  }
  0x82   :  { %168 = vperm.xlu1 %892, %v1176_v2   ;;  %296 = vperm.xlu0 %924, %v1176_v2  }
  0x86   :  { %893 = vset.pattern.permute.xlu1 %v1079_v49  ;;  %927 = vset.pattern.permute.xlu0 %v1080_v50  ;;  %v1108_v49 = vmov 105  }
  0x87   :  { %172 = vperm.xlu1 %893, %v1176_v2   ;;  %308 = vperm.xlu0 %927, %v1176_v2  }
  0x8a   :  { %v33_v51 = vpop.permute.xlu1 %32  ;;  %v25_v52 = vpop.permute.xlu0 %24 }
  0x8b   :  { %895 = vset.pattern.permute.xlu1 %v1081_v53  ;;  %930 = vset.pattern.permute.xlu0 %v1082_v54 }
  0x8c   :  { %180 = vperm.xlu1 %895, %v1176_v2   ;;  %320 = vperm.xlu0 %930, %v1176_v2  }
  0x8f   :  { %v37_v55 = vpop.permute.xlu1 %36  ;;  %v29_v56 = vpop.permute.xlu0 %28 }
  0x90   :  { %v536_v57 = vsel %vm535_vm0, %v25_v52, %v29_v56  ;;  %896 = vset.pattern.permute.xlu1 %v1083_v58  ;;  %933 = vset.pattern.permute.xlu0 %v1084_v59  ;;  %v1110_v52 = vmov 121   ;;  %v1112_v56 = vmov 108  }
  0x91   :  { %v538_v60 = vsel %vm537_vm1, %v536_v57, %v33_v51  ;;  %184 = vperm.xlu1 %896, %v1176_v2   ;;  %332 = vperm.xlu0 %933, %v1176_v2   ;;  %v1109_v51 = vmov 60  }
  0x92   :  { %v540_v62 = vsel %vm539_vm2, %v538_v60, %v37_v55  ;;  %v1111_v55 = vmov 61  }
  0x94   :  { %v41_v61 = vpop.permute.xlu1 %40  ;;  %v45_v63 = vpop.permute.xlu0 %44 }
  0x95   :  { %v542_v0 = vsel %vm541_vm3, %v540_v62, %v41_v61  ;;  %898 = vset.pattern.permute.xlu1 %v1085_v1  ;;  %936 = vset.pattern.permute.xlu0 %v1086_v3  ;;  %v1113_v62 = vmov 63  }
  0x96   :  { %v544_v4 = vsel %vm543_vm4, %v542_v0, %v45_v63  ;;  %192 = vperm.xlu1 %898, %v1176_v2   ;;  %344 = vperm.xlu0 %936, %v1176_v2   ;;  %v1114_v63 = vmov 124  }
  0x99   :  { %v49_v5 = vpop.permute.xlu1 %48  ;;  %v57_v8 = vpop.permute.xlu0 %56 }
  0x9a   :  { %899 = vset.pattern.permute.xlu1 %v1087_v6  ;;  %939 = vset.pattern.permute.xlu0 %v1088_v7  ;;  %v546_v9 = vsel %vm545_vm5, %v544_v4, %v49_v5  ;;  %v1115_v6 = vmov 64   ;;  %v1116_v7 = vmov 111  }
  0x9b   :  { %196 = vperm.xlu1 %899, %v1176_v2   ;;  %356 = vperm.xlu0 %939, %v1176_v2  }
  0x9e   :  { %v53_v10 = vpop.permute.xlu1 %52  ;;  %v69_v18 = vpop.permute.xlu0 %68 }
  0x9f   :  { %v548_v11 = vsel %vm547_vm6, %v546_v9, %v53_v10  ;;  %901 = vset.pattern.permute.xlu1 %v1089_v12  ;;  %942 = vset.pattern.permute.xlu0 %v1090_v13  ;;  %v1117_v13 = vmov 66  }
  0xa0   :  { %v550_v14 = vsel %vm549_vm7, %v548_v11, %v57_v8  ;;  %204 = vperm.xlu1 %901, %v1176_v2   ;;  %368 = vperm.xlu0 %942, %v1176_v2  }
  0xa3   :  { %v61_v15 = vpop.permute.xlu1 %60  ;;  %v81_v28 = vpop.permute.xlu0 %80 }
  0xa4   :  { %902 = vset.pattern.permute.xlu1 %v1091_v16  ;;  %945 = vset.pattern.permute.xlu0 %v1092_v17  ;;  %v552_v19 = vsel %vm551_vm8, %v550_v14, %v61_v15 }
  0xa5   :  { %208 = vperm.xlu1 %902, %v1176_v2   ;;  %380 = vperm.xlu0 %945, %v1176_v2  }
  0xa8   :  { %v65_v20 = vpop.permute.xlu1 %64  ;;  %v93_v54 = vpop.permute.xlu0 %92 }
  0xa9   :  { %v554_v21 = vsel %vm553_vm9, %v552_v19, %v65_v20  ;;  %904 = vset.pattern.permute.xlu1 %v1093_v22  ;;  %948 = vset.pattern.permute.xlu0 %v1094_v23  ;;  %v1119_v23 = vmov 69  }
  0xaa   :  { %v556_v24 = vsel %vm555_vm10, %v554_v21, %v69_v18  ;;  %216 = vperm.xlu1 %904, %v1176_v2   ;;  %392 = vperm.xlu0 %948, %v1176_v2   ;;  %v1118_v18 = vmov 67  }
  0xad   :  { %v73_v25 = vpop.permute.xlu1 %72  ;;  %v105_v61 = vpop.permute.xlu0 %104 }
  0xae   :  { %905 = vset.pattern.permute.xlu1 %v1095_v26  ;;  %951 = vset.pattern.permute.xlu0 %v1096_v27  ;;  %v558_v29 = vsel %vm557_vm11, %v556_v24, %v73_v25  ;;  %v1121_v26 = vmov 70  }
  0xaf   :  { %220 = vperm.xlu1 %905, %v1176_v2   ;;  %404 = vperm.xlu0 %951, %v1176_v2  }
  0xb2   :  { %v77_v30 = vpop.permute.xlu1 %76  ;;  %v117_v5 = vpop.permute.xlu0 %116 }
  0xb3   :  { %v560_v31 = vsel %vm559_vm12, %v558_v29, %v77_v30  ;;  %907 = vset.pattern.permute.xlu1 %v1097_v32  ;;  %954 = vset.pattern.permute.xlu0 %v1098_v33  ;;  %v1123_v30 = vmov 73   ;;  %v1124_v33 = vmov 75  }
  0xb4   :  { %v1258_v34 = vsel %vm561_vm13, %v560_v31, %v81_v28  ;;  %228 = vperm.xlu1 %907, %v1176_v2   ;;  %416 = vperm.xlu0 %954, %v1176_v2   ;;  %v1122_v28 = vmov 72  }
  0xb7   :  { %v1262_v35 = vpop.permute.xlu1 %84  ;;  %v129_v12 = vpop.permute.xlu0 %128 }
  0xb8   :  { %908 = vset.pattern.permute.xlu1 %v1099_v36  ;;  %957 = vset.pattern.permute.xlu0 %v1100_v37  ;;  %v1125_v37 = vmov 76  }
  0xb9   :  { %232 = vperm.xlu1 %908, %v1176_v2   ;;  %420 = vperm.xlu0 %957, %v1176_v2  }
  0xbc   :  { %v89_v38 = vpop.permute.xlu1 %88  ;;  %v141_v19 = vpop.permute.xlu0 %140 }
  0xbd   :  { %910 = vset.pattern.permute.xlu1 %v1101_v39  ;;  %960 = vset.pattern.permute.xlu0 %v1102_v40  ;;  %v565_v57 = vsel %vm535_vm0, %v89_v38, %v93_v54  ;;  %v1128_v54 = vmov 81  }
  0xbe   :  { %240 = vperm.xlu1 %910, %v1176_v2   ;;  %484 = vperm.xlu0 %960, %v1176_v2  }
  0xc1   :  { %v97_v41 = vpop.permute.xlu1 %96  ;;  %v153_v32 = vpop.permute.xlu0 %152 }
  0xc2   :  { %911 = vset.pattern.permute.xlu1 %v1103_v42  ;;  %963 = vset.pattern.permute.xlu0 %v1104_v43  ;;  %v566_v58 = vsel %vm537_vm1, %v565_v57, %v97_v41  ;;  %v1126_v42 = vmov 78  }
  0xc3   :  { %244 = vperm.xlu1 %911, %v1176_v2   ;;  %432 = vperm.xlu0 %963, %v1176_v2  }
  0xc6   :  { %v101_v44 = vpop.permute.xlu1 %100  ;;  %v165_v38 = vpop.permute.xlu0 %164 }
  0xc7   :  { %913 = vset.pattern.permute.xlu1 %v1105_v45  ;;  %966 = vset.pattern.permute.xlu0 %v1106_v46  ;;  %v567_v60 = vsel %vm539_vm2, %v566_v58, %v101_v44 }
  0xc8   :  { %252 = vperm.xlu1 %913, %v1176_v2   ;;  %496 = vperm.xlu0 %966, %v1176_v2   ;;  %v568_v0 = vsel %vm541_vm3, %v567_v60, %v105_v61  ;;  %v1129_v60 = vmov 82  }
  0xcb   :  { %v109_v47 = vpop.permute.xlu1 %108  ;;  %v177_v43 = vpop.permute.xlu0 %176 }
  0xcc   :  { %914 = vset.pattern.permute.xlu1 %v1107_v48  ;;  %969 = vset.pattern.permute.xlu0 %v1108_v49  ;;  %v569_v1 = vsel %vm543_vm4, %v568_v0, %v109_v47  ;;  %v1127_v48 = vmov 79  }
  0xcd   :  { %256 = vperm.xlu1 %914, %v1176_v2   ;;  %444 = vperm.xlu0 %969, %v1176_v2  }
  0xd0   :  { %v113_v50 = vpop.permute.xlu1 %112  ;;  %v189_v49 = vpop.permute.xlu0 %188 }
  0xd1   :  { %916 = vset.pattern.permute.xlu1 %v1109_v51  ;;  %972 = vset.pattern.permute.xlu0 %v1110_v52  ;;  %v570_v4 = vsel %vm545_vm5, %v569_v1, %v113_v50 }
  0xd2   :  { %264 = vperm.xlu1 %916, %v1176_v2   ;;  %508 = vperm.xlu0 %972, %v1176_v2   ;;  %v571_v8 = vsel %vm547_vm6, %v570_v4, %v117_v5 }
  0xd5   :  { %v121_v53 = vpop.permute.xlu1 %120 }
  0xd6   :  { %917 = vset.pattern.permute.xlu1 %v1111_v55  ;;  %975 = vset.pattern.permute.xlu0 %v1112_v56  ;;  %v572_v9 = vsel %vm549_vm7, %v571_v8, %v121_v53  ;;  %v201_v56 = vpop.permute.xlu0 %200  ;;  %v1133_v8 = vmov 87  }
  0xd7   :  { %268 = vperm.xlu1 %917, %v1176_v2   ;;  %456 = vperm.xlu0 %975, %v1176_v2  }
  0xda   :  { %v125_v59 = vpop.permute.xlu1 %124  ;;  %v213_v0 = vpop.permute.xlu0 %212 }
  0xdb   :  { %919 = vset.pattern.permute.xlu1 %v1113_v62  ;;  %978 = vset.pattern.permute.xlu0 %v1114_v63  ;;  %v573_v11 = vsel %vm551_vm8, %v572_v9, %v125_v59 }
  0xdc   :  { %276 = vperm.xlu1 %919, %v1176_v2   ;;  %520 = vperm.xlu0 %978, %v1176_v2   ;;  %v574_v14 = vsel %vm553_vm9, %v573_v11, %v129_v12  ;;  %v1135_v11 = vmov 127  }
  0xdf   :  { %v133_v3 = vpop.permute.xlu1 %132 }
  0xe0   :  { %920 = vset.pattern.permute.xlu1 %v1115_v6  ;;  %981 = vset.pattern.permute.xlu0 %v1116_v7  ;;  %v575_v15 = vsel %vm555_vm10, %v574_v14, %v133_v3  ;;  %v1130_v3 = vmov 84   ;;  %v1132_v6 = vmov 85  }
  0xe1   :  { %280 = vperm.xlu1 %920, %v1176_v2   ;;  %468 = vperm.xlu0 %981, %v1176_v2  }
  0xe4   :  { %v137_v10 = vpop.permute.xlu1 %136 }
  0xe5   :  { %922 = vset.pattern.permute.xlu1 %v1117_v13  ;;  %v576_v17 = vsel %vm557_vm11, %v575_v15, %v137_v10  ;;  %v1134_v10 = vmov 88   ;;  %984 = vset.pattern.permute.xlu0 %v1135_v11  ;;  %v1136_v13 = vmov 90   ;;  %v1137_v15 = vmov 91  }
  0xe6   :  { %288 = vperm.xlu1 %922, %v1176_v2   ;;  %v577_v20 = vsel %vm559_vm12, %v576_v17, %v141_v19 }
  0xe9   :  { %v145_v16 = vpop.permute.xlu1 %144 }
  0xea   :  { %923 = vset.pattern.permute.xlu1 %v1118_v18  ;;  %v578_v21 = vsel %vm561_vm13, %v577_v20, %v145_v16  ;;  %v225_v16 = vpop.permute.xlu0 %224  ;;  %v1138_v18 = vmov 93  }
  0xeb   :  { %292 = vperm.xlu1 %923, %v1176_v2  }
  0xee   :  { %v149_v22 = vpop.permute.xlu1 %148 }
  0xef   :  { %925 = vset.pattern.permute.xlu1 %v1119_v23  ;;  %v579_v24 = vsel %vm563_vm14, %v578_v21, %v149_v22  ;;  %v237_v22 = vpop.permute.xlu0 %236 }
  0xf0   :  { %300 = vperm.xlu1 %925, %v1176_v2   ;;  %671 = vrot.lane.b32.xlu0 %v579_v24, %s1120_s0  ;;  %v1139_v24 = vmov 94  }
  0xf3   :  { %v157_v25 = vpop.permute.xlu1 %156 }
  0xf4   :  { %926 = vset.pattern.permute.xlu1 %v1121_v26  ;;  %v580_v39 = vsel %vm535_vm0, %v153_v32, %v157_v25 }
  0xf5   :  { %304 = vperm.xlu1 %926, %v1176_v2  }
  0xf8   :  { %v161_v27 = vpop.permute.xlu1 %160 }
  0xf9   :  { %928 = vset.pattern.permute.xlu1 %v1122_v28  ;;  %v581_v41 = vsel %vm537_vm1, %v580_v39, %v161_v27 }
  0xfa   :  { %312 = vperm.xlu1 %928, %v1176_v2   ;;  %v582_v44 = vsel %vm539_vm2, %v581_v41, %v165_v38 }
  0xfd   :  { %v169_v29 = vpop.permute.xlu1 %168 }
  0xfe   :  { %929 = vset.pattern.permute.xlu1 %v1123_v30  ;;  %v583_v45 = vsel %vm541_vm3, %v582_v44, %v169_v29  ;;  %v1140_v29 = vmov 96   ;;  %v249_v30 = vpop.permute.xlu0 %248 }
  0xff   :  { %316 = vperm.xlu1 %929, %v1176_v2  }
 0x102   :  { %v173_v31 = vpop.permute.xlu1 %172  ;;  %v261_v39 = vpop.permute.xlu0 %260 }
 0x103   :  { %931 = vset.pattern.permute.xlu1 %v1124_v33  ;;  %v584_v47 = vsel %vm543_vm4, %v583_v45, %v173_v31 }
 0x104   :  { %324 = vperm.xlu1 %931, %v1176_v2   ;;  %v585_v50 = vsel %vm545_vm5, %v584_v47, %v177_v43  ;;  %v1142_v43 = vmov 112  }
 0x106   :  { %v273_v45 = vpop.permute.xlu0 %272 }
 0x107   :  { %v181_v36 = vpop.permute.xlu1 %180 }
 0x108   :  { %932 = vset.pattern.permute.xlu1 %v1125_v37  ;;  %v586_v51 = vsel %vm547_vm6, %v585_v50, %v181_v36  ;;  %v1141_v37 = vmov 97  }
 0x109   :  { %328 = vperm.xlu1 %932, %v1176_v2  }
 0x10c   :  { %v185_v40 = vpop.permute.xlu1 %184 }
 0x10d   :  { %934 = vset.pattern.permute.xlu1 %v1126_v42  ;;  %v587_v53 = vsel %vm549_vm7, %v586_v51, %v185_v40  ;;  %v1145_v51 = vmov 114  }
 0x10e   :  { %336 = vperm.xlu1 %934, %v1176_v2   ;;  %v588_v55 = vsel %vm551_vm8, %v587_v53, %v189_v49 }
 0x111   :  { %v193_v46 = vpop.permute.xlu1 %192 }
 0x112   :  { %935 = vset.pattern.permute.xlu1 %v1127_v48  ;;  %v589_v57 = vsel %vm553_vm9, %v588_v55, %v193_v46  ;;  %v1143_v48 = vmov 113  }
 0x113   :  { %340 = vperm.xlu1 %935, %v1176_v2  }
 0x116   :  { %v197_v52 = vpop.permute.xlu1 %196 }
 0x117   :  { %937 = vset.pattern.permute.xlu1 %v1128_v54  ;;  %v590_v59 = vsel %vm555_vm10, %v589_v57, %v197_v52  ;;  %v285_v52 = vpop.permute.xlu0 %284 }
 0x118   :  { %348 = vperm.xlu1 %937, %v1176_v2   ;;  %v591_v61 = vsel %vm557_vm11, %v590_v59, %v201_v56  ;;  %v1146_v56 = vmov 100   ;;  %v1147_v59 = vmov 101  }
 0x11b   :  { %v205_v58 = vpop.permute.xlu1 %204 }
 0x11c   :  { %938 = vset.pattern.permute.xlu1 %v1129_v60  ;;  %v592_v62 = vsel %vm559_vm12, %v591_v61, %v205_v58  ;;  %v297_v60 = vpop.permute.xlu0 %296 }
 0x11d   :  { %352 = vperm.xlu1 %938, %v1176_v2  }
 0x120   :  { %v209_v63 = vpop.permute.xlu1 %208 }
 0x121   :  { %v593_v1 = vsel %vm561_vm13, %v592_v62, %v209_v63  ;;  %940 = vset.pattern.permute.xlu1 %v1130_v3 }
 0x122   :  { %360 = vperm.xlu1 %940, %v1176_v2   ;;  %v594_v4 = vsel %vm563_vm14, %v593_v1, %v213_v0  ;;  %v1148_v0 = vmov 116  }
 0x123   :  { %675 = vrot.lane.b32.xlu0 %v594_v4, %s1131_s11  ;;  %v1149_v4 = vmov 117  }
 0x125   :  { %v217_v5 = vpop.permute.xlu1 %216 }
 0x126   :  { %941 = vset.pattern.permute.xlu1 %v1132_v6 }
 0x127   :  { %364 = vperm.xlu1 %941, %v1176_v2  }
 0x12a   :  { %v221_v7 = vpop.permute.xlu1 %220 }
 0x12b   :  { %943 = vset.pattern.permute.xlu1 %v1133_v8  ;;  %v595_v19 = vsel %vm535_vm0, %v217_v5, %v221_v7  ;;  %v309_v5 = vpop.permute.xlu0 %308 }
 0x12c   :  { %372 = vperm.xlu1 %943, %v1176_v2   ;;  %v596_v20 = vsel %vm537_vm1, %v595_v19, %v225_v16  ;;  %v1152_v19 = vmov 119  }
 0x12f   :  { %v229_v9 = vpop.permute.xlu1 %228 }
 0x130   :  { %944 = vset.pattern.permute.xlu1 %v1134_v10  ;;  %v597_v23 = vsel %vm539_vm2, %v596_v20, %v229_v9  ;;  %v1150_v9 = vmov 103  }
 0x131   :  { %376 = vperm.xlu1 %944, %v1176_v2  }
 0x134   :  { %v233_v12 = vpop.permute.xlu1 %232 }
 0x135   :  { %946 = vset.pattern.permute.xlu1 %v1136_v13  ;;  %v598_v25 = vsel %vm541_vm3, %v597_v23, %v233_v12  ;;  %v1151_v13 = vmov 104  }
 0x136   :  { %384 = vperm.xlu1 %946, %v1176_v2   ;;  %v599_v26 = vsel %vm543_vm4, %v598_v25, %v237_v22 }
 0x139   :  { %v241_v14 = vpop.permute.xlu1 %240 }
 0x13a   :  { %947 = vset.pattern.permute.xlu1 %v1137_v15  ;;  %v600_v28 = vsel %vm545_vm5, %v599_v26, %v241_v14  ;;  %v985_v14 = vld [vmem:[#allocation2] sm:$0xf]  ;;  %v321_v15 = vpop.permute.xlu0 %320  ;;  %v1154_v26 = vmov 106  }
 0x13b   :  { %388 = vperm.xlu1 %947, %v1176_v2  }
 0x13e   :  { %v245_v17 = vpop.permute.xlu1 %244  ;;  %v333_v22 = vpop.permute.xlu0 %332 }
 0x13f   :  { %949 = vset.pattern.permute.xlu1 %v1138_v18  ;;  %v601_v31 = vsel %vm547_vm6, %v600_v28, %v245_v17 }
 0x140   :  { %396 = vperm.xlu1 %949, %v1176_v2   ;;  %v602_v32 = vsel %vm549_vm7, %v601_v31, %v249_v30  ;;  %v1156_v31 = vmov 122  }
 0x143   :  { %v253_v21 = vpop.permute.xlu1 %252 }
 0x144   :  { %950 = vset.pattern.permute.xlu1 %v1139_v24  ;;  %v603_v36 = vsel %vm551_vm8, %v602_v32, %v253_v21 }
 0x145   :  { %400 = vperm.xlu1 %950, %v1176_v2  }
 0x148   :  { %v257_v27 = vpop.permute.xlu1 %256 }
 0x149   :  { %952 = vset.pattern.permute.xlu1 %v1140_v29  ;;  %v604_v38 = vsel %vm553_vm9, %v603_v36, %v257_v27  ;;  %v1155_v29 = vmov 107  }
 0x14a   :  { %408 = vperm.xlu1 %952, %v1176_v2   ;;  %v605_v40 = vsel %vm555_vm10, %v604_v38, %v261_v39  ;;  %v345_v39 = vpop.permute.xlu0 %344 }
 0x14d   :  { %v265_v33 = vpop.permute.xlu1 %264 }
 0x14e   :  { %953 = vset.pattern.permute.xlu1 %v1141_v37  ;;  %v606_v42 = vsel %vm557_vm11, %v605_v40, %v265_v33  ;;  %v1157_v33 = vmov 123   ;;  %v1158_v37 = vmov 109   ;;  %v1159_v40 = vmov 110  }
 0x14f   :  { %412 = vperm.xlu1 %953, %v1176_v2  }
 0x152   :  { %v269_v41 = vpop.permute.xlu1 %268 }
 0x153   :  { %955 = vset.pattern.permute.xlu1 %v1142_v43  ;;  %v607_v44 = vsel %vm559_vm12, %v606_v42, %v269_v41  ;;  %v1160_v42 = vmov 125   ;;  %v357_v43 = vpop.permute.xlu0 %356 }
 0x154   :  { %472 = vperm.xlu1 %955, %v1176_v2   ;;  %v608_v47 = vsel %vm561_vm13, %v607_v44, %v273_v45 }
 0x157   :  { %v277_v46 = vpop.permute.xlu1 %276 }
 0x158   :  { %956 = vset.pattern.permute.xlu1 %v1143_v48  ;;  %v609_v49 = vsel %vm563_vm14, %v608_v47, %v277_v46  ;;  %v1161_v47 = vmov 126   ;;  %v369_v48 = vpop.permute.xlu0 %368 }
 0x159   :  { %476 = vperm.xlu1 %956, %v1176_v2   ;;  %679 = vrot.lane.b32.xlu0 %v609_v49, %s1144_s12 }
 0x15c   :  { %v281_v50 = vpop.permute.xlu1 %280 }
 0x15d   :  { %958 = vset.pattern.permute.xlu1 %v1145_v51  ;;  %v610_v53 = vsel %vm535_vm0, %v281_v50, %v285_v52 }
 0x15e   :  { %480 = vperm.xlu1 %958, %v1176_v2  }
 0x161   :  { %v289_v54 = vpop.permute.xlu1 %288 }
 0x162   :  { %v611_v55 = vsel %vm537_vm1, %v610_v53, %v289_v54  ;;  %959 = vset.pattern.permute.xlu1 %v1146_v56  ;;  %v381_v53 = vpop.permute.xlu0 %380 }
 0x163   :  { %424 = vperm.xlu1 %959, %v1176_v2  }
 0x166   :  { %v293_v57 = vpop.permute.xlu1 %292 }
 0x167   :  { %v612_v58 = vsel %vm539_vm2, %v611_v55, %v293_v57  ;;  %961 = vset.pattern.permute.xlu1 %v1147_v59  ;;  %v393_v59 = vpop.permute.xlu0 %392 }
 0x168   :  { %428 = vperm.xlu1 %961, %v1176_v2   ;;  %v613_v62 = vsel %vm541_vm3, %v612_v58, %v297_v60 }
 0x16b   :  { %v301_v61 = vpop.permute.xlu1 %300 }
 0x16c   :  { %v614_v63 = vsel %vm543_vm4, %v613_v62, %v301_v61  ;;  %962 = vset.pattern.permute.xlu1 %v1148_v0 }
 0x16d   :  { %488 = vperm.xlu1 %962, %v1176_v2  }
 0x170   :  { %v305_v1 = vpop.permute.xlu1 %304 }
 0x171   :  { %v615_v3 = vsel %vm545_vm5, %v614_v63, %v305_v1  ;;  %964 = vset.pattern.permute.xlu1 %v1149_v4  ;;  %v405_v1 = vpop.permute.xlu0 %404 }
 0x172   :  { %492 = vperm.xlu1 %964, %v1176_v2   ;;  %v616_v7 = vsel %vm547_vm6, %v615_v3, %v309_v5 }
 0x175   :  { %v313_v6 = vpop.permute.xlu1 %312 }
 0x176   :  { %v617_v8 = vsel %vm549_vm7, %v616_v7, %v313_v6  ;;  %965 = vset.pattern.permute.xlu1 %v1150_v9 }
 0x177   :  { %436 = vperm.xlu1 %965, %v1176_v2   ;;  %v1153_v2 = vmov 120  }
 0x17a   :  { %v317_v10 = vpop.permute.xlu1 %316 }
 0x17b   :  { %v618_v12 = vsel %vm551_vm8, %v617_v8, %v317_v10  ;;  %967 = vset.pattern.permute.xlu1 %v1151_v13 }
 0x17c   :  { %440 = vperm.xlu1 %967, %v985_v14   ;;  %v619_v17 = vsel %vm553_vm9, %v618_v12, %v321_v15 }
 0x17f   :  { %v325_v16 = vpop.permute.xlu1 %324 }
 0x180   :  { %v620_v18 = vsel %vm555_vm10, %v619_v17, %v325_v16  ;;  %968 = vset.pattern.permute.xlu1 %v1152_v19 }
 0x181   :  { %500 = vperm.xlu1 %968, %v985_v14  }
 0x184   :  { %v329_v20 = vpop.permute.xlu1 %328 }
 0x185   :  { %v621_v21 = vsel %vm557_vm11, %v620_v18, %v329_v20  ;;  %970 = vset.pattern.permute.xlu1 %v1153_v2 }
 0x186   :  { %504 = vperm.xlu1 %970, %v985_v14   ;;  %v622_v24 = vsel %vm559_vm12, %v621_v21, %v333_v22 }
 0x189   :  { %v337_v23 = vpop.permute.xlu1 %336 }
 0x18a   :  { %v623_v25 = vsel %vm561_vm13, %v622_v24, %v337_v23  ;;  %971 = vset.pattern.permute.xlu1 %v1154_v26 }
 0x18b   :  { %448 = vperm.xlu1 %971, %v985_v14  }
 0x18e   :  { %v341_v27 = vpop.permute.xlu1 %340 }
 0x18f   :  { %v1376_v28 = vsel %vm563_vm14, %v623_v25, %v341_v27  ;;  %973 = vset.pattern.permute.xlu1 %v1155_v29 }
 0x190   :  { %452 = vperm.xlu1 %973, %v985_v14  }
 0x193   :  { %v349_v30 = vpop.permute.xlu1 %348 }
 0x194   :  { %974 = vset.pattern.permute.xlu1 %v1156_v31  ;;  %v625_v44 = vsel %vm535_vm0, %v345_v39, %v349_v30 }
 0x195   :  { %512 = vperm.xlu1 %974, %v985_v14  }
 0x198   :  { %v353_v32 = vpop.permute.xlu1 %352 }
 0x199   :  { %976 = vset.pattern.permute.xlu1 %v1157_v33  ;;  %v626_v46 = vsel %vm537_vm1, %v625_v44, %v353_v32 }
 0x19a   :  { %516 = vperm.xlu1 %976, %v985_v14   ;;  %v627_v49 = vsel %vm539_vm2, %v626_v46, %v357_v43 }
 0x19d   :  { %v361_v36 = vpop.permute.xlu1 %360 }
 0x19e   :  { %977 = vset.pattern.permute.xlu1 %v1158_v37  ;;  %v628_v50 = vsel %vm541_vm3, %v627_v49, %v361_v36 }
 0x19f   :  { %460 = vperm.xlu1 %977, %v985_v14  }
 0x1a2   :  { %v365_v38 = vpop.permute.xlu1 %364 }
 0x1a3   :  { %979 = vset.pattern.permute.xlu1 %v1159_v40  ;;  %v629_v52 = vsel %vm543_vm4, %v628_v50, %v365_v38 }
 0x1a4   :  { %464 = vperm.xlu1 %979, %v985_v14   ;;  %v630_v54 = vsel %vm545_vm5, %v629_v52, %v369_v48 }
 0x1a7   :  { %v373_v41 = vpop.permute.xlu1 %372 }
 0x1a8   :  { %980 = vset.pattern.permute.xlu1 %v1160_v42  ;;  %v631_v55 = vsel %vm547_vm6, %v630_v54, %v373_v41 }
 0x1a9   :  { %524 = vperm.xlu1 %980, %v985_v14  }
 0x1ac   :  { %v377_v45 = vpop.permute.xlu1 %376 }
 0x1ad   :  { %982 = vset.pattern.permute.xlu1 %v1161_v47  ;;  %v632_v57 = vsel %vm549_vm7, %v631_v55, %v377_v45 }
 0x1ae   :  { %528 = vperm.xlu1 %982, %v985_v14   ;;  %v633_v58 = vsel %vm551_vm8, %v632_v57, %v381_v53 }
 0x1b1   :  { %v385_v51 = vpop.permute.xlu1 %384 }
 0x1b2   :  { %983 = vset.pattern.permute.xlu1 %v1135_v11  ;;  %v634_v60 = vsel %vm553_vm9, %v633_v58, %v385_v51 }
 0x1b3   :  { %532 = vperm.xlu1 %983, %v985_v14   ;;  %v417_v14 = vpop.permute.xlu0 %416 }
 0x1b6   :  { %v389_v56 = vpop.permute.xlu1 %388 }
 0x1b7   :  { %v635_v62 = vsel %vm555_vm10, %v634_v60, %v389_v56  ;;  %v421_v16 = vpop.permute.xlu0 %420 }
 0x1b8   :  { %v636_v63 = vsel %vm557_vm11, %v635_v62, %v393_v59 }
 0x1bb   :  { %v397_v61 = vpop.permute.xlu1 %396  ;;  %v485_v18 = vpop.permute.xlu0 %484 }
 0x1bc   :  { %v637_v11 = vsel %vm559_vm12, %v636_v63, %v397_v61 }
 0x1bf   :  { %v433_v20 = vpop.permute.xlu0 %432 }
 0x1c0   :  { %v401_v0 = vpop.permute.xlu1 %400 }
 0x1c1   :  { %v638_v3 = vsel %vm561_vm13, %v637_v11, %v401_v0 }
 0x1c2   :  { %v639_v4 = vsel %vm563_vm14, %v638_v3, %v405_v1 }
 0x1c3   :  { %683 = vrot.lane.b32.xlu1 %v639_v4, %s1120_s0  ;;  %v497_v22 = vpop.permute.xlu0 %496 }
 0x1c5   :  { %v409_v5 = vpop.permute.xlu1 %408 }
 0x1c7   :  { %v445_v24 = vpop.permute.xlu0 %444 }
 0x1ca   :  { %v413_v6 = vpop.permute.xlu1 %412 }
 0x1cb   :  { %v640_v25 = vsel %vm535_vm0, %v409_v5, %v413_v6  ;;  %v509_v29 = vpop.permute.xlu0 %508 }
 0x1cc   :  { %v641_v27 = vsel %vm537_vm1, %v640_v25, %v417_v14 }
 0x1cd   :  { %v642_v30 = vsel %vm539_vm2, %v641_v27, %v421_v16 }
 0x1cf   :  { %v473_v7 = vpop.permute.xlu1 %472  ;;  %v457_v36 = vpop.permute.xlu0 %456 }
 0x1d3   :  { %v521_v43 = vpop.permute.xlu0 %520 }
 0x1d4   :  { %v477_v8 = vpop.permute.xlu1 %476 }
 0x1d5   :  { %v655_v41 = vsel %vm535_vm0, %v473_v7, %v477_v8  ;;  %vm696_vm0 = vcmask 523264  }
 0x1d7   :  { %v469_v54 = vpop.permute.xlu0 %468 }
 0x1d9   :  { %v481_v9 = vpop.permute.xlu1 %480 }
 0x1da   :  { %v656_v44 = vsel %vm537_vm1, %v655_v41, %v481_v9  ;;  %vm698_vm1 = vcmask 785408  }
 0x1db   :  { %v657_v48 = vsel %vm539_vm2, %v656_v44, %v485_v18  ;;  %v672_v6 = vpop.permute.xlu0 %671 }
 0x1de   :  { %v425_v10 = vpop.permute.xlu1 %424 }
 0x1df   :  { %v643_v31 = vsel %vm541_vm3, %v642_v30, %v425_v10  ;;  %v676_v8 = vpop.permute.xlu0 %675  ;;  %v564_v10 = vsel %vm563_vm14, %v1258_v34, %v1262_v35 }
 0x1e3   :  { %v429_v12 = vpop.permute.xlu1 %428 }
 0x1e4   :  { %v644_v33 = vsel %vm543_vm4, %v643_v31, %v429_v12  ;;  %v680_v12 = vpop.permute.xlu0 %679 }
 0x1e5   :  { %v645_v37 = vsel %vm545_vm5, %v644_v33, %v433_v20 }
 0x1e8   :  { %v489_v13 = vpop.permute.xlu1 %488 }
 0x1e9   :  { %v658_v49 = vsel %vm541_vm3, %v657_v48, %v489_v13  ;;  %v695_v13 = vsel %vm694_vm15, %v564_v10, %v672_v6 }
 0x1ed   :  { %v493_v15 = vpop.permute.xlu1 %492 }
 0x1ee   :  { %v659_v51 = vsel %vm543_vm4, %v658_v49, %v493_v15  ;;  %v697_v15 = vsel %vm696_vm0, %v695_v13, %v676_v8 }
 0x1ef   :  { %v660_v57 = vsel %vm545_vm5, %v659_v51, %v497_v22  ;;  %v699_v18 = vsel %vm698_vm1, %v697_v15, %v680_v12 }
 0x1f2   :  { %v437_v17 = vpop.permute.xlu1 %436 }
 0x1f3   :  { %v646_v38 = vsel %vm547_vm6, %v645_v37, %v437_v17 }
 0x1f7   :  { %v441_v19 = vpop.permute.xlu1 %440 }
 0x1f8   :  { %v647_v40 = vsel %vm549_vm7, %v646_v38, %v441_v19 }
 0x1f9   :  { %v648_v42 = vsel %vm551_vm8, %v647_v40, %v445_v24 }
 0x1fc   :  { %v501_v21 = vpop.permute.xlu1 %500 }
 0x1fd   :  { %v661_v58 = vsel %vm547_vm6, %v660_v57, %v501_v21 }
 0x201   :  { %v505_v2 = vpop.permute.xlu1 %504 }
 0x202   :  { %v662_v59 = vsel %vm549_vm7, %v661_v58, %v505_v2 }
 0x203   :  { %v663_v61 = vsel %vm551_vm8, %v662_v59, %v509_v29 }
 0x206   :  { %v449_v23 = vpop.permute.xlu1 %448 }
 0x207   :  { %v649_v45 = vsel %vm553_vm9, %v648_v42, %v449_v23 }
 0x20b   :  { %v453_v26 = vpop.permute.xlu1 %452 }
 0x20c   :  { %v650_v47 = vsel %vm555_vm10, %v649_v45, %v453_v26 }
 0x20d   :  { %v651_v50 = vsel %vm557_vm11, %v650_v47, %v457_v36 }
 0x210   :  { %v513_v32 = vpop.permute.xlu1 %512 }
 0x211   :  { %v664_v62 = vsel %vm553_vm9, %v663_v61, %v513_v32 }
 0x215   :  { %v517_v39 = vpop.permute.xlu1 %516 }
 0x216   :  { %v665_v63 = vsel %vm555_vm10, %v664_v62, %v517_v39 }
 0x217   :  { %v666_v0 = vsel %vm557_vm11, %v665_v63, %v521_v43 }
 0x21a   :  { %v461_v46 = vpop.permute.xlu1 %460 }
 0x21b   :  { %v652_v52 = vsel %vm559_vm12, %v651_v50, %v461_v46 }
 0x21f   :  { %v465_v53 = vpop.permute.xlu1 %464 }
 0x220   :  { %v653_v55 = vsel %vm561_vm13, %v652_v52, %v465_v53 }
 0x221   :  { %v654_v56 = vsel %vm563_vm14, %v653_v55, %v469_v54 }
 0x222   :  { %687 = vrot.lane.b32.xlu1 %v654_v56, %s1131_s11 }
 0x224   :  { %v525_v60 = vpop.permute.xlu1 %524 }
 0x225   :  { %v667_v1 = vsel %vm559_vm12, %v666_v0, %v525_v60 }
 0x229   :  { %v529_v11 = vpop.permute.xlu1 %528 }
 0x22a   :  { %v668_v3 = vsel %vm561_vm13, %v667_v1, %v529_v11 }
 0x22e   :  { %v533_v4 = vpop.permute.xlu1 %532 }
 0x22f   :  { %v669_v5 = vsel %vm563_vm14, %v668_v3, %v533_v4 }
 0x230   :  { %691 = vrot.lane.b32.xlu1 %v669_v5, %s1144_s12 }
 0x235   :  { %v684_v7 = vpop.permute.xlu1 %683 }
 0x236   :  { %v700_v14 = vsel %vm694_vm15, %v1376_v28, %v684_v7 }
 0x294   :  { %v688_v9 = vpop.permute.xlu1 %687 }
 0x295   :  { %v701_v16 = vsel %vm696_vm0, %v700_v14, %v688_v9 }
 0x2a2   :  { %v692_v17 = vpop.permute.xlu1 %691 }
 0x2a3   :  { %v702_v19 = vsel %vm698_vm1, %v701_v16, %v692_v17 }
 0x2a4   :  { %v705_v20 = vcombine.low %v699_v18, %v702_v19 }
 0x2a6   :  { %707 = vst [vmem:[#allocation5] sm:$0xff] %v705_v20 }
 0x2a7   :  { %1017 = shalt.err (!%p1014_p9)
}
 0x2a8   :  { %717 = dma.vmem_to_hbm [thread:$0]  %s715_s14, 128, %s1435_s1, [#allocation4]  }
 0x2a9   :  { %1028 = dma.done.wait [#allocation4], 128  }
 0x2aa   :  { %1029 = vsyncadd [#allocation4], 4294967168 }
 0x2ab   :  { %721 = vsyncpa [#allocation3], 1 }
 0x2ac   :  { %722 = vsyncpa [#allocation4], 1 }

</bundles_post_ra>
